<compile_context>
chip_gen: v7x
topology: tpu7x:2x2x1
jax: 0.10.0
libtpu: 0.0.40
codegen_flags: <defaults>
</compile_context>

<pallas_src>
import functools

import jax
import jax.numpy as jnp
from jax.experimental import pallas as pl
from jax.experimental.pallas import tpu as pltpu


def lstm_fc_kernel(x_ref, wih0_ref, wblk_ref, b0_ref, b1_ref, wfc_ref, bfc_ref,
                   out_ref, z_ref, *, hidden_size, seq_len, batch):
    """x_ref: (T*B, I) bf16 time-major flattened input.

    Weights (pre-transposed / pre-fused in the wrapper):
      wih0 (I, 4H) bf16
      wblk (2H, 8H) bf16 : [[Whh0, Wih1], [0, Whh1]]   (columns [l0-rec | l1-gates])
      b0/b1 (1, 4H) f32 (ih+hh biases summed), wfc (1, H) f32, bfc (1, 1) f32.
    z_ref: (B, 2H) bf16 persistent scratch holding [h0(t), h1(t-1)].
    """
    H = hidden_size
    T = seq_len
    B = batch

    # ---- one-time loads / hoisted work --------------------------------------
    wblk = wblk_ref[...]                                   # (2H, 8H) bf16
    b1_b = jnp.broadcast_to(b1_ref[...], (B, 4 * H))       # hoisted broadcast

    # Hoisted layer-0 input projection: one (T*B, I) @ (I, 4H) matmul replaces
    # T tiny matmuls on the serial chain; layer-0 bias folded in once.
    preact0 = (jnp.dot(x_ref[...], wih0_ref[...],
                       preferred_element_type=jnp.float32)
               + b0_ref[...])                              # (T*B, 4H) f32

    def gates_to_hc(gates, c):
        # gates: (B, 4H) f32, PyTorch gate order [i, f, g, o].
        # Two EUP passes over the full 4H lane width, then slice.
        sig = jax.nn.sigmoid(gates)
        tnh = jnp.tanh(gates)
        i = sig[:, 0 * H:1 * H]
        f = sig[:, 1 * H:2 * H]
        g = tnh[:, 2 * H:3 * H]
        o = sig[:, 3 * H:4 * H]
        c_new = f * c + i * g
        h_new = o * jnp.tanh(c_new)
        return h_new, c_new

    c0 = jnp.zeros((B, H), jnp.float32)
    c1 = jnp.zeros((B, H), jnp.float32)
    h1 = jnp.zeros((B, H), jnp.float32)

    # ---- prologue: layer-0 step 0 (h0(-1) = 0 -> no recurrent term) ---------
    z_ref[...] = jnp.zeros_like(z_ref)                     # h1(-1) = 0 half
    h0, c0 = gates_to_hc(preact0[0:B, :], c0)
    z_ref[:, 0:H] = h0.astype(jnp.bfloat16)

    # ---- skewed steady-state recurrence (fully unrolled, T static) ----------
    # At the top of iteration t, z_ref = [h0(t), h1(t-1)].
    for t in range(T):
        fused = jnp.dot(z_ref[...], wblk,
                        preferred_element_type=jnp.float32)          # (B, 8H)

        # layer-1 cell at step t
        gates1 = fused[:, 4 * H:8 * H] + b1_b
        h1, c1 = gates_to_hc(gates1, c1)

        if t < T - 1:
            # layer-0 cell at step t+1 (recurrent part came from the fused pass)
            gates0 = preact0[(t + 1) * B:(t + 2) * B, :] + fused[:, 0:4 * H]
            h0, c0 = gates_to_hc(gates0, c0)
            # update state scratch for the next iteration's fused matmul
            z_ref[:, 0:H] = h0.astype(jnp.bfloat16)
            z_ref[:, H:2 * H] = h1.astype(jnp.bfloat16)

    # ---- final FC on the last timestep's top-layer hidden state -------------
    # VPU broadcast-multiply + lane reduction (N=1 output, MXU pass not worth it).
    out_ref[...] = (jnp.sum(h1 * wfc_ref[...], axis=-1, keepdims=True)
                    + bfc_ref[...])


def sales_forecast_lstm(x, params, hidden_size):
    """x: (B, T, I) float32 (batch_first like the PyTorch module). Returns (B, 1)."""
    B, T, I = x.shape
    H = hidden_size
    Bp = ((B + 15) // 16) * 16          # bf16 native sublane tile is (16, 128)

    # Time-major + batch pad; negligible HBM traffic at these shapes.
    x_tm = jnp.transpose(x, (1, 0, 2)).astype(jnp.float32)            # (T, B, I)
    if Bp != B:
        x_tm = jnp.pad(x_tm, ((0, 0), (0, Bp - B), (0, 0)))
    x_flat = x_tm.reshape(T * Bp, I).astype(jnp.bfloat16)             # MXU LHS dtype

    wih0 = params["w_ih0"].T.astype(jnp.bfloat16)                     # (I, 4H)
    whh0 = params["w_hh0"].T.astype(jnp.float32)                      # (H, 4H)
    wih1 = params["w_ih1"].T.astype(jnp.float32)                      # (H, 4H)
    whh1 = params["w_hh1"].T.astype(jnp.float32)                      # (H, 4H)
    # Fused block weight for the skewed one-matmul-per-step recurrence:
    #   [h0(t), h1(t-1)] @ wblk -> [h0(t)@Whh0 | gates1(t) pre-bias]
    w_blk = jnp.concatenate(
        [jnp.concatenate([whh0, wih1], axis=1),
         jnp.concatenate([jnp.zeros((H, 4 * H), jnp.float32), whh1], axis=1)],
        axis=0).astype(jnp.bfloat16)                                  # (2H, 8H)

    b0 = (params["b_ih0"] + params["b_hh0"]).reshape(1, 4 * H).astype(jnp.float32)
    b1 = (params["b_ih1"] + params["b_hh1"]).reshape(1, 4 * H).astype(jnp.float32)
    wfc = params["w_fc"].reshape(1, H).astype(jnp.float32)
    bfc = params["b_fc"].reshape(1, 1).astype(jnp.float32)

    kernel = functools.partial(lstm_fc_kernel, hidden_size=H, seq_len=T, batch=Bp)
    vmem = pl.BlockSpec(memory_space=pltpu.MemorySpace.VMEM)
    out_p = pl.pallas_call(
        kernel,
        out_shape=jax.ShapeDtypeStruct((Bp, 1), jnp.float32),
        in_specs=[vmem] * 7,
        out_specs=vmem,
        scratch_shapes=[pltpu.VMEM((Bp, 2 * H), jnp.bfloat16)],
    )(x_flat, wih0, w_blk, b0, b1, wfc, bfc)
    return out_p[:B]


def init_params(key, input_size, hidden_size):
    """Deterministic synthetic params with the same shapes as the PyTorch module."""
    H = hidden_size
    ks = jax.random.split(key, 10)
    bound = 1.0 / float(H) ** 0.5
    u = lambda k, shape: jax.random.uniform(k, shape, jnp.float32, -bound, bound)
    return dict(
        w_ih0=u(ks[0], (4 * H, input_size)),
        w_hh0=u(ks[1], (4 * H, H)),
        b_ih0=u(ks[2], (4 * H,)),
        b_hh0=u(ks[3], (4 * H,)),
        w_ih1=u(ks[4], (4 * H, H)),
        w_hh1=u(ks[5], (4 * H, H)),
        b_ih1=u(ks[6], (4 * H,)),
        b_hh1=u(ks[7], (4 * H,)),
        w_fc=u(ks[8], (1, H)),
        b_fc=u(ks[9], (1,)),
    )


def _reference(x, params, hidden_size):
    """Pure-JAX f32 reference of the PyTorch forward for a correctness check."""
    H = hidden_size
    B = x.shape[0]

    def cell(x_t, h, c, wih, whh, b):
        gates = x_t @ wih.T + h @ whh.T + b
        i = jax.nn.sigmoid(gates[:, 0 * H:1 * H])
        f = jax.nn.sigmoid(gates[:, 1 * H:2 * H])
        g = jnp.tanh(gates[:, 2 * H:3 * H])
        o = jax.nn.sigmoid(gates[:, 3 * H:4 * H])
        c = f * c + i * g
        return o * jnp.tanh(c), c

    h0 = c0 = h1 = c1 = jnp.zeros((B, H), jnp.float32)
    b0 = params["b_ih0"] + params["b_hh0"]
    b1 = params["b_ih1"] + params["b_hh1"]
    for t in range(x.shape[1]):
        h0, c0 = cell(x[:, t, :], h0, c0, params["w_ih0"], params["w_hh0"], b0)
        h1, c1 = cell(h0, h1, c1, params["w_ih1"], params["w_hh1"], b1)
    return h1 @ params["w_fc"].T + params["b_fc"]


if __name__ == "__main__":
    B, T, I, H = 2, 8, 4, 32

    key = jax.random.PRNGKey(0)
    k_x, k_p = jax.random.split(key)
    x = jax.random.normal(k_x, (B, T, I), jnp.float32)
    params = init_params(k_p, I, H)

    out = sales_forecast_lstm(x, params, H)
    out = jax.block_until_ready(out)

    ref = _reference(x, params, H)
    assert out.shape == (B, 1), out.shape
    # bf16 MXU operands -> slightly looser tolerance than the pure-f32 reference.
    assert jnp.allclose(out, ref, rtol=2e-2, atol=2e-2), (out, ref)

    print("KERNEL_OK")
</pallas_src>

<mosaic_0001>
module attributes {stable_mosaic.version = 11 : i64} {
  func.func @lstm_fc_kernel(%arg0: memref<128x4xbf16, #tpu.memory_space<vmem>>, %arg1: memref<4x128xbf16, #tpu.memory_space<vmem>>, %arg2: memref<64x256xbf16, #tpu.memory_space<vmem>>, %arg3: memref<1x128xf32, #tpu.memory_space<vmem>>, %arg4: memref<1x128xf32, #tpu.memory_space<vmem>>, %arg5: memref<1x32xf32, #tpu.memory_space<vmem>>, %arg6: memref<1x1xf32, #tpu.memory_space<vmem>>, %arg7: memref<16x1xf32, #tpu.memory_space<vmem>>, %arg8: memref<16x64xbf16, #tpu.memory_space<vmem>>) attributes {dimension_semantics = [], scalar_prefetch = 0 : i64, scratch_operands = 1 : i64, tpu.core_type = #tpu.core_type<tc>} {
    %c0 = arith.constant 0 : index
    %c0_0 = arith.constant 0 : index
    %0 = vector.load %arg2[%c0, %c0_0] : memref<64x256xbf16, #tpu.memory_space<vmem>>, vector<64x256xbf16>
    %c0_1 = arith.constant 0 : index
    %c0_2 = arith.constant 0 : index
    %1 = vector.load %arg4[%c0_1, %c0_2] : memref<1x128xf32, #tpu.memory_space<vmem>>, vector<1x128xf32>
    %2 = vector.shape_cast %1 : vector<1x128xf32> to vector<1x128xf32>
    %3 = vector.broadcast %2 : vector<1x128xf32> to vector<16x128xf32>
    %c0_3 = arith.constant 0 : index
    %c0_4 = arith.constant 0 : index
    %4 = vector.load %arg0[%c0_3, %c0_4] : memref<128x4xbf16, #tpu.memory_space<vmem>>, vector<128x4xbf16>
    %c0_5 = arith.constant 0 : index
    %c0_6 = arith.constant 0 : index
    %5 = vector.load %arg1[%c0_5, %c0_6] : memref<4x128xbf16, #tpu.memory_space<vmem>>, vector<4x128xbf16>
    %cst = arith.constant dense<0.000000e+00> : vector<128x128xf32>
    %6 = tpu.matmul %4, %5, %cst {dimension_numbers = #tpu.dot_dimension_numbers<[1], [0], [0], [1], [0, 0, 1, 1], [], []>} : vector<128x4xbf16>, vector<4x128xbf16>, vector<128x128xf32> -> vector<128x128xf32>
    %c0_7 = arith.constant 0 : index
    %c0_8 = arith.constant 0 : index
    %7 = vector.load %arg3[%c0_7, %c0_8] : memref<1x128xf32, #tpu.memory_space<vmem>>, vector<1x128xf32>
    %8 = vector.broadcast %7 : vector<1x128xf32> to vector<128x128xf32>
    %9 = arith.addf %6, %8 : vector<128x128xf32>
    %cst_9 = arith.constant 0.000000e+00 : f32
    %10 = vector.broadcast %cst_9 : f32 to vector<16x32xf32>
    %cst_10 = arith.constant 0.000000e+00 : f32
    %11 = vector.broadcast %cst_10 : f32 to vector<16x32xf32>
    %cst_11 = arith.constant 0.000000e+00 : bf16
    %12 = vector.broadcast %cst_11 : bf16 to vector<16x64xbf16>
    %c0_12 = arith.constant 0 : index
    %c0_13 = arith.constant 0 : index
    %13 = vector.load %arg8[%c0_12, %c0_13] : memref<16x64xbf16, #tpu.memory_space<vmem>>, vector<16x64xbf16>
    tpu.vector_store %arg8[%c0_12, %c0_13], %12 {strides = array<i32>} : memref<16x64xbf16, #tpu.memory_space<vmem>>, vector<16x64xbf16>,
    %14 = vector.extract_strided_slice %9 {offsets = [0, 0], sizes = [16, 128], strides = [1, 1]} : vector<128x128xf32> to vector<16x128xf32>
    %15 = arith.negf %14 : vector<16x128xf32>
    %16 = math.exp %15 : vector<16x128xf32>
    %cst_14 = arith.constant 1.000000e+00 : f32
    %17 = vector.broadcast %cst_14 : f32 to vector<16x128xf32>
    %18 = arith.addf %17, %16 : vector<16x128xf32>
    %19 = arith.divf %17, %18 : vector<16x128xf32>
    %20 = math.tanh %14 : vector<16x128xf32>
    %21 = vector.extract_strided_slice %19 {offsets = [0, 0], sizes = [16, 32], strides = [1, 1]} : vector<16x128xf32> to vector<16x32xf32>
    %22 = vector.extract_strided_slice %19 {offsets = [0, 32], sizes = [16, 32], strides = [1, 1]} : vector<16x128xf32> to vector<16x32xf32>
    %23 = vector.extract_strided_slice %20 {offsets = [0, 64], sizes = [16, 32], strides = [1, 1]} : vector<16x128xf32> to vector<16x32xf32>
    %24 = vector.extract_strided_slice %19 {offsets = [0, 96], sizes = [16, 32], strides = [1, 1]} : vector<16x128xf32> to vector<16x32xf32>
    %25 = arith.mulf %22, %10 : vector<16x32xf32>
    %26 = arith.mulf %21, %23 : vector<16x32xf32>
    %27 = arith.addf %25, %26 : vector<16x32xf32>
    %28 = math.tanh %27 : vector<16x32xf32>
    %29 = arith.mulf %24, %28 : vector<16x32xf32>
    %30 = arith.truncf %29 : vector<16x32xf32> to vector<16x32xbf16>
    %c0_15 = arith.constant 0 : index
    %c0_16 = arith.constant 0 : index
    %31 = vector.load %arg8[%c0_15, %c0_16] : memref<16x64xbf16, #tpu.memory_space<vmem>>, vector<16x32xbf16>
    tpu.vector_store %arg8[%c0_15, %c0_16], %30 {strides = array<i32>} : memref<16x64xbf16, #tpu.memory_space<vmem>>, vector<16x32xbf16>,
    %c0_17 = arith.constant 0 : index
    %c0_18 = arith.constant 0 : index
    %32 = vector.load %arg8[%c0_17, %c0_18] : memref<16x64xbf16, #tpu.memory_space<vmem>>, vector<16x64xbf16>
    %cst_19 = arith.constant dense<0.000000e+00> : vector<16x256xf32>
    %33 = tpu.matmul %32, %0, %cst_19 {dimension_numbers = #tpu.dot_dimension_numbers<[1], [0], [0], [1], [0, 0, 1, 1], [], []>} : vector<16x64xbf16>, vector<64x256xbf16>, vector<16x256xf32> -> vector<16x256xf32>
    %34 = vector.extract_strided_slice %33 {offsets = [0, 128], sizes = [16, 128], strides = [1, 1]} : vector<16x256xf32> to vector<16x128xf32>
    %35 = arith.addf %34, %3 : vector<16x128xf32>
    %36 = arith.negf %35 : vector<16x128xf32>
    %37 = math.exp %36 : vector<16x128xf32>
    %cst_20 = arith.constant 1.000000e+00 : f32
    %38 = vector.broadcast %cst_20 : f32 to vector<16x128xf32>
    %39 = arith.addf %38, %37 : vector<16x128xf32>
    %40 = arith.divf %38, %39 : vector<16x128xf32>
    %41 = math.tanh %35 : vector<16x128xf32>
    %42 = vector.extract_strided_slice %40 {offsets = [0, 0], sizes = [16, 32], strides = [1, 1]} : vector<16x128xf32> to vector<16x32xf32>
    %43 = vector.extract_strided_slice %40 {offsets = [0, 32], sizes = [16, 32], strides = [1, 1]} : vector<16x128xf32> to vector<16x32xf32>
    %44 = vector.extract_strided_slice %41 {offsets = [0, 64], sizes = [16, 32], strides = [1, 1]} : vector<16x128xf32> to vector<16x32xf32>
    %45 = vector.extract_strided_slice %40 {offsets = [0, 96], sizes = [16, 32], strides = [1, 1]} : vector<16x128xf32> to vector<16x32xf32>
    %46 = arith.mulf %43, %11 : vector<16x32xf32>
    %47 = arith.mulf %42, %44 : vector<16x32xf32>
    %48 = arith.addf %46, %47 : vector<16x32xf32>
    %49 = math.tanh %48 : vector<16x32xf32>
    %50 = arith.mulf %45, %49 : vector<16x32xf32>
    %51 = vector.extract_strided_slice %9 {offsets = [16, 0], sizes = [16, 128], strides = [1, 1]} : vector<128x128xf32> to vector<16x128xf32>
    %52 = vector.extract_strided_slice %33 {offsets = [0, 0], sizes = [16, 128], strides = [1, 1]} : vector<16x256xf32> to vector<16x128xf32>
    %53 = arith.addf %51, %52 : vector<16x128xf32>
    %54 = arith.negf %53 : vector<16x128xf32>
    %55 = math.exp %54 : vector<16x128xf32>
    %cst_21 = arith.constant 1.000000e+00 : f32
    %56 = vector.broadcast %cst_21 : f32 to vector<16x128xf32>
    %57 = arith.addf %56, %55 : vector<16x128xf32>
    %58 = arith.divf %56, %57 : vector<16x128xf32>
    %59 = math.tanh %53 : vector<16x128xf32>
    %60 = vector.extract_strided_slice %58 {offsets = [0, 0], sizes = [16, 32], strides = [1, 1]} : vector<16x128xf32> to vector<16x32xf32>
    %61 = vector.extract_strided_slice %58 {offsets = [0, 32], sizes = [16, 32], strides = [1, 1]} : vector<16x128xf32> to vector<16x32xf32>
    %62 = vector.extract_strided_slice %59 {offsets = [0, 64], sizes = [16, 32], strides = [1, 1]} : vector<16x128xf32> to vector<16x32xf32>
    %63 = vector.extract_strided_slice %58 {offsets = [0, 96], sizes = [16, 32], strides = [1, 1]} : vector<16x128xf32> to vector<16x32xf32>
    %64 = arith.mulf %61, %27 : vector<16x32xf32>
    %65 = arith.mulf %60, %62 : vector<16x32xf32>
    %66 = arith.addf %64, %65 : vector<16x32xf32>
    %67 = math.tanh %66 : vector<16x32xf32>
    %68 = arith.mulf %63, %67 : vector<16x32xf32>
    %69 = arith.truncf %68 : vector<16x32xf32> to vector<16x32xbf16>
    %c0_22 = arith.constant 0 : index
    %c0_23 = arith.constant 0 : index
    %70 = vector.load %arg8[%c0_22, %c0_23] : memref<16x64xbf16, #tpu.memory_space<vmem>>, vector<16x32xbf16>
    tpu.vector_store %arg8[%c0_22, %c0_23], %69 {strides = array<i32>} : memref<16x64xbf16, #tpu.memory_space<vmem>>, vector<16x32xbf16>,
    %71 = arith.truncf %50 : vector<16x32xf32> to vector<16x32xbf16>
    %c0_24 = arith.constant 0 : index
    %c32 = arith.constant 32 : index
    %72 = vector.load %arg8[%c0_24, %c32] : memref<16x64xbf16, #tpu.memory_space<vmem>>, vector<16x32xbf16>
    tpu.vector_store %arg8[%c0_24, %c32], %71 {strides = array<i32>} : memref<16x64xbf16, #tpu.memory_space<vmem>>, vector<16x32xbf16>,
    %c0_25 = arith.constant 0 : index
    %c0_26 = arith.constant 0 : index
    %73 = vector.load %arg8[%c0_25, %c0_26] : memref<16x64xbf16, #tpu.memory_space<vmem>>, vector<16x64xbf16>
    %cst_27 = arith.constant dense<0.000000e+00> : vector<16x256xf32>
    %74 = tpu.matmul %73, %0, %cst_27 {dimension_numbers = #tpu.dot_dimension_numbers<[1], [0], [0], [1], [0, 0, 1, 1], [], []>} : vector<16x64xbf16>, vector<64x256xbf16>, vector<16x256xf32> -> vector<16x256xf32>
    %75 = vector.extract_strided_slice %74 {offsets = [0, 128], sizes = [16, 128], strides = [1, 1]} : vector<16x256xf32> to vector<16x128xf32>
    %76 = arith.addf %75, %3 : vector<16x128xf32>
    %77 = arith.negf %76 : vector<16x128xf32>
    %78 = math.exp %77 : vector<16x128xf32>
    %cst_28 = arith.constant 1.000000e+00 : f32
    %79 = vector.broadcast %cst_28 : f32 to vector<16x128xf32>
    %80 = arith.addf %79, %78 : vector<16x128xf32>
    %81 = arith.divf %79, %80 : vector<16x128xf32>
    %82 = math.tanh %76 : vector<16x128xf32>
    %83 = vector.extract_strided_slice %81 {offsets = [0, 0], sizes = [16, 32], strides = [1, 1]} : vector<16x128xf32> to vector<16x32xf32>
    %84 = vector.extract_strided_slice %81 {offsets = [0, 32], sizes = [16, 32], strides = [1, 1]} : vector<16x128xf32> to vector<16x32xf32>
    %85 = vector.extract_strided_slice %82 {offsets = [0, 64], sizes = [16, 32], strides = [1, 1]} : vector<16x128xf32> to vector<16x32xf32>
    %86 = vector.extract_strided_slice %81 {offsets = [0, 96], sizes = [16, 32], strides = [1, 1]} : vector<16x128xf32> to vector<16x32xf32>
    %87 = arith.mulf %84, %48 : vector<16x32xf32>
    %88 = arith.mulf %83, %85 : vector<16x32xf32>
    %89 = arith.addf %87, %88 : vector<16x32xf32>
    %90 = math.tanh %89 : vector<16x32xf32>
    %91 = arith.mulf %86, %90 : vector<16x32xf32>
    %92 = vector.extract_strided_slice %9 {offsets = [32, 0], sizes = [16, 128], strides = [1, 1]} : vector<128x128xf32> to vector<16x128xf32>
    %93 = vector.extract_strided_slice %74 {offsets = [0, 0], sizes = [16, 128], strides = [1, 1]} : vector<16x256xf32> to vector<16x128xf32>
    %94 = arith.addf %92, %93 : vector<16x128xf32>
    %95 = arith.negf %94 : vector<16x128xf32>
    %96 = math.exp %95 : vector<16x128xf32>
    %cst_29 = arith.constant 1.000000e+00 : f32
    %97 = vector.broadcast %cst_29 : f32 to vector<16x128xf32>
    %98 = arith.addf %97, %96 : vector<16x128xf32>
    %99 = arith.divf %97, %98 : vector<16x128xf32>
    %100 = math.tanh %94 : vector<16x128xf32>
    %101 = vector.extract_strided_slice %99 {offsets = [0, 0], sizes = [16, 32], strides = [1, 1]} : vector<16x128xf32> to vector<16x32xf32>
    %102 = vector.extract_strided_slice %99 {offsets = [0, 32], sizes = [16, 32], strides = [1, 1]} : vector<16x128xf32> to vector<16x32xf32>
    %103 = vector.extract_strided_slice %100 {offsets = [0, 64], sizes = [16, 32], strides = [1, 1]} : vector<16x128xf32> to vector<16x32xf32>
    %104 = vector.extract_strided_slice %99 {offsets = [0, 96], sizes = [16, 32], strides = [1, 1]} : vector<16x128xf32> to vector<16x32xf32>
    %105 = arith.mulf %102, %66 : vector<16x32xf32>
    %106 = arith.mulf %101, %103 : vector<16x32xf32>
    %107 = arith.addf %105, %106 : vector<16x32xf32>
    %108 = math.tanh %107 : vector<16x32xf32>
    %109 = arith.mulf %104, %108 : vector<16x32xf32>
    %110 = arith.truncf %109 : vector<16x32xf32> to vector<16x32xbf16>
    %c0_30 = arith.constant 0 : index
    %c0_31 = arith.constant 0 : index
    %111 = vector.load %arg8[%c0_30, %c0_31] : memref<16x64xbf16, #tpu.memory_space<vmem>>, vector<16x32xbf16>
    tpu.vector_store %arg8[%c0_30, %c0_31], %110 {strides = array<i32>} : memref<16x64xbf16, #tpu.memory_space<vmem>>, vector<16x32xbf16>,
    %112 = arith.truncf %91 : vector<16x32xf32> to vector<16x32xbf16>
    %c0_32 = arith.constant 0 : index
    %c32_33 = arith.constant 32 : index
    %113 = vector.load %arg8[%c0_32, %c32_33] : memref<16x64xbf16, #tpu.memory_space<vmem>>, vector<16x32xbf16>
    tpu.vector_store %arg8[%c0_32, %c32_33], %112 {strides = array<i32>} : memref<16x64xbf16, #tpu.memory_space<vmem>>, vector<16x32xbf16>,
    %c0_34 = arith.constant 0 : index
    %c0_35 = arith.constant 0 : index
    %114 = vector.load %arg8[%c0_34, %c0_35] : memref<16x64xbf16, #tpu.memory_space<vmem>>, vector<16x64xbf16>
    %cst_36 = arith.constant dense<0.000000e+00> : vector<16x256xf32>
    %115 = tpu.matmul %114, %0, %cst_36 {dimension_numbers = #tpu.dot_dimension_numbers<[1], [0], [0], [1], [0, 0, 1, 1], [], []>} : vector<16x64xbf16>, vector<64x256xbf16>, vector<16x256xf32> -> vector<16x256xf32>
    %116 = vector.extract_strided_slice %115 {offsets = [0, 128], sizes = [16, 128], strides = [1, 1]} : vector<16x256xf32> to vector<16x128xf32>
    %117 = arith.addf %116, %3 : vector<16x128xf32>
    %118 = arith.negf %117 : vector<16x128xf32>
    %119 = math.exp %118 : vector<16x128xf32>
    %cst_37 = arith.constant 1.000000e+00 : f32
    %120 = vector.broadcast %cst_37 : f32 to vector<16x128xf32>
    %121 = arith.addf %120, %119 : vector<16x128xf32>
    %122 = arith.divf %120, %121 : vector<16x128xf32>
    %123 = math.tanh %117 : vector<16x128xf32>
    %124 = vector.extract_strided_slice %122 {offsets = [0, 0], sizes = [16, 32], strides = [1, 1]} : vector<16x128xf32> to vector<16x32xf32>
    %125 = vector.extract_strided_slice %122 {offsets = [0, 32], sizes = [16, 32], strides = [1, 1]} : vector<16x128xf32> to vector<16x32xf32>
    %126 = vector.extract_strided_slice %123 {offsets = [0, 64], sizes = [16, 32], strides = [1, 1]} : vector<16x128xf32> to vector<16x32xf32>
    %127 = vector.extract_strided_slice %122 {offsets = [0, 96], sizes = [16, 32], strides = [1, 1]} : vector<16x128xf32> to vector<16x32xf32>
    %128 = arith.mulf %125, %89 : vector<16x32xf32>
    %129 = arith.mulf %124, %126 : vector<16x32xf32>
    %130 = arith.addf %128, %129 : vector<16x32xf32>
    %131 = math.tanh %130 : vector<16x32xf32>
    %132 = arith.mulf %127, %131 : vector<16x32xf32>
    %133 = vector.extract_strided_slice %9 {offsets = [48, 0], sizes = [16, 128], strides = [1, 1]} : vector<128x128xf32> to vector<16x128xf32>
    %134 = vector.extract_strided_slice %115 {offsets = [0, 0], sizes = [16, 128], strides = [1, 1]} : vector<16x256xf32> to vector<16x128xf32>
    %135 = arith.addf %133, %134 : vector<16x128xf32>
    %136 = arith.negf %135 : vector<16x128xf32>
    %137 = math.exp %136 : vector<16x128xf32>
    %cst_38 = arith.constant 1.000000e+00 : f32
    %138 = vector.broadcast %cst_38 : f32 to vector<16x128xf32>
    %139 = arith.addf %138, %137 : vector<16x128xf32>
    %140 = arith.divf %138, %139 : vector<16x128xf32>
    %141 = math.tanh %135 : vector<16x128xf32>
    %142 = vector.extract_strided_slice %140 {offsets = [0, 0], sizes = [16, 32], strides = [1, 1]} : vector<16x128xf32> to vector<16x32xf32>
    %143 = vector.extract_strided_slice %140 {offsets = [0, 32], sizes = [16, 32], strides = [1, 1]} : vector<16x128xf32> to vector<16x32xf32>
    %144 = vector.extract_strided_slice %141 {offsets = [0, 64], sizes = [16, 32], strides = [1, 1]} : vector<16x128xf32> to vector<16x32xf32>
    %145 = vector.extract_strided_slice %140 {offsets = [0, 96], sizes = [16, 32], strides = [1, 1]} : vector<16x128xf32> to vector<16x32xf32>
    %146 = arith.mulf %143, %107 : vector<16x32xf32>
    %147 = arith.mulf %142, %144 : vector<16x32xf32>
    %148 = arith.addf %146, %147 : vector<16x32xf32>
    %149 = math.tanh %148 : vector<16x32xf32>
    %150 = arith.mulf %145, %149 : vector<16x32xf32>
    %151 = arith.truncf %150 : vector<16x32xf32> to vector<16x32xbf16>
    %c0_39 = arith.constant 0 : index
    %c0_40 = arith.constant 0 : index
    %152 = vector.load %arg8[%c0_39, %c0_40] : memref<16x64xbf16, #tpu.memory_space<vmem>>, vector<16x32xbf16>
    tpu.vector_store %arg8[%c0_39, %c0_40], %151 {strides = array<i32>} : memref<16x64xbf16, #tpu.memory_space<vmem>>, vector<16x32xbf16>,
    %153 = arith.truncf %132 : vector<16x32xf32> to vector<16x32xbf16>
    %c0_41 = arith.constant 0 : index
    %c32_42 = arith.constant 32 : index
    %154 = vector.load %arg8[%c0_41, %c32_42] : memref<16x64xbf16, #tpu.memory_space<vmem>>, vector<16x32xbf16>
    tpu.vector_store %arg8[%c0_41, %c32_42], %153 {strides = array<i32>} : memref<16x64xbf16, #tpu.memory_space<vmem>>, vector<16x32xbf16>,
    %c0_43 = arith.constant 0 : index
    %c0_44 = arith.constant 0 : index
    %155 = vector.load %arg8[%c0_43, %c0_44] : memref<16x64xbf16, #tpu.memory_space<vmem>>, vector<16x64xbf16>
    %cst_45 = arith.constant dense<0.000000e+00> : vector<16x256xf32>
    %156 = tpu.matmul %155, %0, %cst_45 {dimension_numbers = #tpu.dot_dimension_numbers<[1], [0], [0], [1], [0, 0, 1, 1], [], []>} : vector<16x64xbf16>, vector<64x256xbf16>, vector<16x256xf32> -> vector<16x256xf32>
    %157 = vector.extract_strided_slice %156 {offsets = [0, 128], sizes = [16, 128], strides = [1, 1]} : vector<16x256xf32> to vector<16x128xf32>
    %158 = arith.addf %157, %3 : vector<16x128xf32>
    %159 = arith.negf %158 : vector<16x128xf32>
    %160 = math.exp %159 : vector<16x128xf32>
    %cst_46 = arith.constant 1.000000e+00 : f32
    %161 = vector.broadcast %cst_46 : f32 to vector<16x128xf32>
    %162 = arith.addf %161, %160 : vector<16x128xf32>
    %163 = arith.divf %161, %162 : vector<16x128xf32>
    %164 = math.tanh %158 : vector<16x128xf32>
    %165 = vector.extract_strided_slice %163 {offsets = [0, 0], sizes = [16, 32], strides = [1, 1]} : vector<16x128xf32> to vector<16x32xf32>
    %166 = vector.extract_strided_slice %163 {offsets = [0, 32], sizes = [16, 32], strides = [1, 1]} : vector<16x128xf32> to vector<16x32xf32>
    %167 = vector.extract_strided_slice %164 {offsets = [0, 64], sizes = [16, 32], strides = [1, 1]} : vector<16x128xf32> to vector<16x32xf32>
    %168 = vector.extract_strided_slice %163 {offsets = [0, 96], sizes = [16, 32], strides = [1, 1]} : vector<16x128xf32> to vector<16x32xf32>
    %169 = arith.mulf %166, %130 : vector<16x32xf32>
    %170 = arith.mulf %165, %167 : vector<16x32xf32>
    %171 = arith.addf %169, %170 : vector<16x32xf32>
    %172 = math.tanh %171 : vector<16x32xf32>
    %173 = arith.mulf %168, %172 : vector<16x32xf32>
    %174 = vector.extract_strided_slice %9 {offsets = [64, 0], sizes = [16, 128], strides = [1, 1]} : vector<128x128xf32> to vector<16x128xf32>
    %175 = vector.extract_strided_slice %156 {offsets = [0, 0], sizes = [16, 128], strides = [1, 1]} : vector<16x256xf32> to vector<16x128xf32>
    %176 = arith.addf %174, %175 : vector<16x128xf32>
    %177 = arith.negf %176 : vector<16x128xf32>
    %178 = math.exp %177 : vector<16x128xf32>
    %cst_47 = arith.constant 1.000000e+00 : f32
    %179 = vector.broadcast %cst_47 : f32 to vector<16x128xf32>
    %180 = arith.addf %179, %178 : vector<16x128xf32>
    %181 = arith.divf %179, %180 : vector<16x128xf32>
    %182 = math.tanh %176 : vector<16x128xf32>
    %183 = vector.extract_strided_slice %181 {offsets = [0, 0], sizes = [16, 32], strides = [1, 1]} : vector<16x128xf32> to vector<16x32xf32>
    %184 = vector.extract_strided_slice %181 {offsets = [0, 32], sizes = [16, 32], strides = [1, 1]} : vector<16x128xf32> to vector<16x32xf32>
    %185 = vector.extract_strided_slice %182 {offsets = [0, 64], sizes = [16, 32], strides = [1, 1]} : vector<16x128xf32> to vector<16x32xf32>
    %186 = vector.extract_strided_slice %181 {offsets = [0, 96], sizes = [16, 32], strides = [1, 1]} : vector<16x128xf32> to vector<16x32xf32>
    %187 = arith.mulf %184, %148 : vector<16x32xf32>
    %188 = arith.mulf %183, %185 : vector<16x32xf32>
    %189 = arith.addf %187, %188 : vector<16x32xf32>
    %190 = math.tanh %189 : vector<16x32xf32>
    %191 = arith.mulf %186, %190 : vector<16x32xf32>
    %192 = arith.truncf %191 : vector<16x32xf32> to vector<16x32xbf16>
    %c0_48 = arith.constant 0 : index
    %c0_49 = arith.constant 0 : index
    %193 = vector.load %arg8[%c0_48, %c0_49] : memref<16x64xbf16, #tpu.memory_space<vmem>>, vector<16x32xbf16>
    tpu.vector_store %arg8[%c0_48, %c0_49], %192 {strides = array<i32>} : memref<16x64xbf16, #tpu.memory_space<vmem>>, vector<16x32xbf16>,
    %194 = arith.truncf %173 : vector<16x32xf32> to vector<16x32xbf16>
    %c0_50 = arith.constant 0 : index
    %c32_51 = arith.constant 32 : index
    %195 = vector.load %arg8[%c0_50, %c32_51] : memref<16x64xbf16, #tpu.memory_space<vmem>>, vector<16x32xbf16>
    tpu.vector_store %arg8[%c0_50, %c32_51], %194 {strides = array<i32>} : memref<16x64xbf16, #tpu.memory_space<vmem>>, vector<16x32xbf16>,
    %c0_52 = arith.constant 0 : index
    %c0_53 = arith.constant 0 : index
    %196 = vector.load %arg8[%c0_52, %c0_53] : memref<16x64xbf16, #tpu.memory_space<vmem>>, vector<16x64xbf16>
    %cst_54 = arith.constant dense<0.000000e+00> : vector<16x256xf32>
    %197 = tpu.matmul %196, %0, %cst_54 {dimension_numbers = #tpu.dot_dimension_numbers<[1], [0], [0], [1], [0, 0, 1, 1], [], []>} : vector<16x64xbf16>, vector<64x256xbf16>, vector<16x256xf32> -> vector<16x256xf32>
    %198 = vector.extract_strided_slice %197 {offsets = [0, 128], sizes = [16, 128], strides = [1, 1]} : vector<16x256xf32> to vector<16x128xf32>
    %199 = arith.addf %198, %3 : vector<16x128xf32>
    %200 = arith.negf %199 : vector<16x128xf32>
    %201 = math.exp %200 : vector<16x128xf32>
    %cst_55 = arith.constant 1.000000e+00 : f32
    %202 = vector.broadcast %cst_55 : f32 to vector<16x128xf32>
    %203 = arith.addf %202, %201 : vector<16x128xf32>
    %204 = arith.divf %202, %203 : vector<16x128xf32>
    %205 = math.tanh %199 : vector<16x128xf32>
    %206 = vector.extract_strided_slice %204 {offsets = [0, 0], sizes = [16, 32], strides = [1, 1]} : vector<16x128xf32> to vector<16x32xf32>
    %207 = vector.extract_strided_slice %204 {offsets = [0, 32], sizes = [16, 32], strides = [1, 1]} : vector<16x128xf32> to vector<16x32xf32>
    %208 = vector.extract_strided_slice %205 {offsets = [0, 64], sizes = [16, 32], strides = [1, 1]} : vector<16x128xf32> to vector<16x32xf32>
    %209 = vector.extract_strided_slice %204 {offsets = [0, 96], sizes = [16, 32], strides = [1, 1]} : vector<16x128xf32> to vector<16x32xf32>
    %210 = arith.mulf %207, %171 : vector<16x32xf32>
    %211 = arith.mulf %206, %208 : vector<16x32xf32>
    %212 = arith.addf %210, %211 : vector<16x32xf32>
    %213 = math.tanh %212 : vector<16x32xf32>
    %214 = arith.mulf %209, %213 : vector<16x32xf32>
    %215 = vector.extract_strided_slice %9 {offsets = [80, 0], sizes = [16, 128], strides = [1, 1]} : vector<128x128xf32> to vector<16x128xf32>
    %216 = vector.extract_strided_slice %197 {offsets = [0, 0], sizes = [16, 128], strides = [1, 1]} : vector<16x256xf32> to vector<16x128xf32>
    %217 = arith.addf %215, %216 : vector<16x128xf32>
    %218 = arith.negf %217 : vector<16x128xf32>
    %219 = math.exp %218 : vector<16x128xf32>
    %cst_56 = arith.constant 1.000000e+00 : f32
    %220 = vector.broadcast %cst_56 : f32 to vector<16x128xf32>
    %221 = arith.addf %220, %219 : vector<16x128xf32>
    %222 = arith.divf %220, %221 : vector<16x128xf32>
    %223 = math.tanh %217 : vector<16x128xf32>
    %224 = vector.extract_strided_slice %222 {offsets = [0, 0], sizes = [16, 32], strides = [1, 1]} : vector<16x128xf32> to vector<16x32xf32>
    %225 = vector.extract_strided_slice %222 {offsets = [0, 32], sizes = [16, 32], strides = [1, 1]} : vector<16x128xf32> to vector<16x32xf32>
    %226 = vector.extract_strided_slice %223 {offsets = [0, 64], sizes = [16, 32], strides = [1, 1]} : vector<16x128xf32> to vector<16x32xf32>
    %227 = vector.extract_strided_slice %222 {offsets = [0, 96], sizes = [16, 32], strides = [1, 1]} : vector<16x128xf32> to vector<16x32xf32>
    %228 = arith.mulf %225, %189 : vector<16x32xf32>
    %229 = arith.mulf %224, %226 : vector<16x32xf32>
    %230 = arith.addf %228, %229 : vector<16x32xf32>
    %231 = math.tanh %230 : vector<16x32xf32>
    %232 = arith.mulf %227, %231 : vector<16x32xf32>
    %233 = arith.truncf %232 : vector<16x32xf32> to vector<16x32xbf16>
    %c0_57 = arith.constant 0 : index
    %c0_58 = arith.constant 0 : index
    %234 = vector.load %arg8[%c0_57, %c0_58] : memref<16x64xbf16, #tpu.memory_space<vmem>>, vector<16x32xbf16>
    tpu.vector_store %arg8[%c0_57, %c0_58], %233 {strides = array<i32>} : memref<16x64xbf16, #tpu.memory_space<vmem>>, vector<16x32xbf16>,
    %235 = arith.truncf %214 : vector<16x32xf32> to vector<16x32xbf16>
    %c0_59 = arith.constant 0 : index
    %c32_60 = arith.constant 32 : index
    %236 = vector.load %arg8[%c0_59, %c32_60] : memref<16x64xbf16, #tpu.memory_space<vmem>>, vector<16x32xbf16>
    tpu.vector_store %arg8[%c0_59, %c32_60], %235 {strides = array<i32>} : memref<16x64xbf16, #tpu.memory_space<vmem>>, vector<16x32xbf16>,
    %c0_61 = arith.constant 0 : index
    %c0_62 = arith.constant 0 : index
    %237 = vector.load %arg8[%c0_61, %c0_62] : memref<16x64xbf16, #tpu.memory_space<vmem>>, vector<16x64xbf16>
    %cst_63 = arith.constant dense<0.000000e+00> : vector<16x256xf32>
    %238 = tpu.matmul %237, %0, %cst_63 {dimension_numbers = #tpu.dot_dimension_numbers<[1], [0], [0], [1], [0, 0, 1, 1], [], []>} : vector<16x64xbf16>, vector<64x256xbf16>, vector<16x256xf32> -> vector<16x256xf32>
    %239 = vector.extract_strided_slice %238 {offsets = [0, 128], sizes = [16, 128], strides = [1, 1]} : vector<16x256xf32> to vector<16x128xf32>
    %240 = arith.addf %239, %3 : vector<16x128xf32>
    %241 = arith.negf %240 : vector<16x128xf32>
    %242 = math.exp %241 : vector<16x128xf32>
    %cst_64 = arith.constant 1.000000e+00 : f32
    %243 = vector.broadcast %cst_64 : f32 to vector<16x128xf32>
    %244 = arith.addf %243, %242 : vector<16x128xf32>
    %245 = arith.divf %243, %244 : vector<16x128xf32>
    %246 = math.tanh %240 : vector<16x128xf32>
    %247 = vector.extract_strided_slice %245 {offsets = [0, 0], sizes = [16, 32], strides = [1, 1]} : vector<16x128xf32> to vector<16x32xf32>
    %248 = vector.extract_strided_slice %245 {offsets = [0, 32], sizes = [16, 32], strides = [1, 1]} : vector<16x128xf32> to vector<16x32xf32>
    %249 = vector.extract_strided_slice %246 {offsets = [0, 64], sizes = [16, 32], strides = [1, 1]} : vector<16x128xf32> to vector<16x32xf32>
    %250 = vector.extract_strided_slice %245 {offsets = [0, 96], sizes = [16, 32], strides = [1, 1]} : vector<16x128xf32> to vector<16x32xf32>
    %251 = arith.mulf %248, %212 : vector<16x32xf32>
    %252 = arith.mulf %247, %249 : vector<16x32xf32>
    %253 = arith.addf %251, %252 : vector<16x32xf32>
    %254 = math.tanh %253 : vector<16x32xf32>
    %255 = arith.mulf %250, %254 : vector<16x32xf32>
    %256 = vector.extract_strided_slice %9 {offsets = [96, 0], sizes = [16, 128], strides = [1, 1]} : vector<128x128xf32> to vector<16x128xf32>
    %257 = vector.extract_strided_slice %238 {offsets = [0, 0], sizes = [16, 128], strides = [1, 1]} : vector<16x256xf32> to vector<16x128xf32>
    %258 = arith.addf %256, %257 : vector<16x128xf32>
    %259 = arith.negf %258 : vector<16x128xf32>
    %260 = math.exp %259 : vector<16x128xf32>
    %cst_65 = arith.constant 1.000000e+00 : f32
    %261 = vector.broadcast %cst_65 : f32 to vector<16x128xf32>
    %262 = arith.addf %261, %260 : vector<16x128xf32>
    %263 = arith.divf %261, %262 : vector<16x128xf32>
    %264 = math.tanh %258 : vector<16x128xf32>
    %265 = vector.extract_strided_slice %263 {offsets = [0, 0], sizes = [16, 32], strides = [1, 1]} : vector<16x128xf32> to vector<16x32xf32>
    %266 = vector.extract_strided_slice %263 {offsets = [0, 32], sizes = [16, 32], strides = [1, 1]} : vector<16x128xf32> to vector<16x32xf32>
    %267 = vector.extract_strided_slice %264 {offsets = [0, 64], sizes = [16, 32], strides = [1, 1]} : vector<16x128xf32> to vector<16x32xf32>
    %268 = vector.extract_strided_slice %263 {offsets = [0, 96], sizes = [16, 32], strides = [1, 1]} : vector<16x128xf32> to vector<16x32xf32>
    %269 = arith.mulf %266, %230 : vector<16x32xf32>
    %270 = arith.mulf %265, %267 : vector<16x32xf32>
    %271 = arith.addf %269, %270 : vector<16x32xf32>
    %272 = math.tanh %271 : vector<16x32xf32>
    %273 = arith.mulf %268, %272 : vector<16x32xf32>
    %274 = arith.truncf %273 : vector<16x32xf32> to vector<16x32xbf16>
    %c0_66 = arith.constant 0 : index
    %c0_67 = arith.constant 0 : index
    %275 = vector.load %arg8[%c0_66, %c0_67] : memref<16x64xbf16, #tpu.memory_space<vmem>>, vector<16x32xbf16>
    tpu.vector_store %arg8[%c0_66, %c0_67], %274 {strides = array<i32>} : memref<16x64xbf16, #tpu.memory_space<vmem>>, vector<16x32xbf16>,
    %276 = arith.truncf %255 : vector<16x32xf32> to vector<16x32xbf16>
    %c0_68 = arith.constant 0 : index
    %c32_69 = arith.constant 32 : index
    %277 = vector.load %arg8[%c0_68, %c32_69] : memref<16x64xbf16, #tpu.memory_space<vmem>>, vector<16x32xbf16>
    tpu.vector_store %arg8[%c0_68, %c32_69], %276 {strides = array<i32>} : memref<16x64xbf16, #tpu.memory_space<vmem>>, vector<16x32xbf16>,
    %c0_70 = arith.constant 0 : index
    %c0_71 = arith.constant 0 : index
    %278 = vector.load %arg8[%c0_70, %c0_71] : memref<16x64xbf16, #tpu.memory_space<vmem>>, vector<16x64xbf16>
    %cst_72 = arith.constant dense<0.000000e+00> : vector<16x256xf32>
    %279 = tpu.matmul %278, %0, %cst_72 {dimension_numbers = #tpu.dot_dimension_numbers<[1], [0], [0], [1], [0, 0, 1, 1], [], []>} : vector<16x64xbf16>, vector<64x256xbf16>, vector<16x256xf32> -> vector<16x256xf32>
    %280 = vector.extract_strided_slice %279 {offsets = [0, 128], sizes = [16, 128], strides = [1, 1]} : vector<16x256xf32> to vector<16x128xf32>
    %281 = arith.addf %280, %3 : vector<16x128xf32>
    %282 = arith.negf %281 : vector<16x128xf32>
    %283 = math.exp %282 : vector<16x128xf32>
    %cst_73 = arith.constant 1.000000e+00 : f32
    %284 = vector.broadcast %cst_73 : f32 to vector<16x128xf32>
    %285 = arith.addf %284, %283 : vector<16x128xf32>
    %286 = arith.divf %284, %285 : vector<16x128xf32>
    %287 = math.tanh %281 : vector<16x128xf32>
    %288 = vector.extract_strided_slice %286 {offsets = [0, 0], sizes = [16, 32], strides = [1, 1]} : vector<16x128xf32> to vector<16x32xf32>
    %289 = vector.extract_strided_slice %286 {offsets = [0, 32], sizes = [16, 32], strides = [1, 1]} : vector<16x128xf32> to vector<16x32xf32>
    %290 = vector.extract_strided_slice %287 {offsets = [0, 64], sizes = [16, 32], strides = [1, 1]} : vector<16x128xf32> to vector<16x32xf32>
    %291 = vector.extract_strided_slice %286 {offsets = [0, 96], sizes = [16, 32], strides = [1, 1]} : vector<16x128xf32> to vector<16x32xf32>
    %292 = arith.mulf %289, %253 : vector<16x32xf32>
    %293 = arith.mulf %288, %290 : vector<16x32xf32>
    %294 = arith.addf %292, %293 : vector<16x32xf32>
    %295 = math.tanh %294 : vector<16x32xf32>
    %296 = arith.mulf %291, %295 : vector<16x32xf32>
    %297 = vector.extract_strided_slice %9 {offsets = [112, 0], sizes = [16, 128], strides = [1, 1]} : vector<128x128xf32> to vector<16x128xf32>
    %298 = vector.extract_strided_slice %279 {offsets = [0, 0], sizes = [16, 128], strides = [1, 1]} : vector<16x256xf32> to vector<16x128xf32>
    %299 = arith.addf %297, %298 : vector<16x128xf32>
    %300 = arith.negf %299 : vector<16x128xf32>
    %301 = math.exp %300 : vector<16x128xf32>
    %cst_74 = arith.constant 1.000000e+00 : f32
    %302 = vector.broadcast %cst_74 : f32 to vector<16x128xf32>
    %303 = arith.addf %302, %301 : vector<16x128xf32>
    %304 = arith.divf %302, %303 : vector<16x128xf32>
    %305 = math.tanh %299 : vector<16x128xf32>
    %306 = vector.extract_strided_slice %304 {offsets = [0, 0], sizes = [16, 32], strides = [1, 1]} : vector<16x128xf32> to vector<16x32xf32>
    %307 = vector.extract_strided_slice %304 {offsets = [0, 32], sizes = [16, 32], strides = [1, 1]} : vector<16x128xf32> to vector<16x32xf32>
    %308 = vector.extract_strided_slice %305 {offsets = [0, 64], sizes = [16, 32], strides = [1, 1]} : vector<16x128xf32> to vector<16x32xf32>
    %309 = vector.extract_strided_slice %304 {offsets = [0, 96], sizes = [16, 32], strides = [1, 1]} : vector<16x128xf32> to vector<16x32xf32>
    %310 = arith.mulf %307, %271 : vector<16x32xf32>
    %311 = arith.mulf %306, %308 : vector<16x32xf32>
    %312 = arith.addf %310, %311 : vector<16x32xf32>
    %313 = math.tanh %312 : vector<16x32xf32>
    %314 = arith.mulf %309, %313 : vector<16x32xf32>
    %315 = arith.truncf %314 : vector<16x32xf32> to vector<16x32xbf16>
    %c0_75 = arith.constant 0 : index
    %c0_76 = arith.constant 0 : index
    %316 = vector.load %arg8[%c0_75, %c0_76] : memref<16x64xbf16, #tpu.memory_space<vmem>>, vector<16x32xbf16>
    tpu.vector_store %arg8[%c0_75, %c0_76], %315 {strides = array<i32>} : memref<16x64xbf16, #tpu.memory_space<vmem>>, vector<16x32xbf16>,
    %317 = arith.truncf %296 : vector<16x32xf32> to vector<16x32xbf16>
    %c0_77 = arith.constant 0 : index
    %c32_78 = arith.constant 32 : index
    %318 = vector.load %arg8[%c0_77, %c32_78] : memref<16x64xbf16, #tpu.memory_space<vmem>>, vector<16x32xbf16>
    tpu.vector_store %arg8[%c0_77, %c32_78], %317 {strides = array<i32>} : memref<16x64xbf16, #tpu.memory_space<vmem>>, vector<16x32xbf16>,
    %c0_79 = arith.constant 0 : index
    %c0_80 = arith.constant 0 : index
    %319 = vector.load %arg8[%c0_79, %c0_80] : memref<16x64xbf16, #tpu.memory_space<vmem>>, vector<16x64xbf16>
    %cst_81 = arith.constant dense<0.000000e+00> : vector<16x256xf32>
    %320 = tpu.matmul %319, %0, %cst_81 {dimension_numbers = #tpu.dot_dimension_numbers<[1], [0], [0], [1], [0, 0, 1, 1], [], []>} : vector<16x64xbf16>, vector<64x256xbf16>, vector<16x256xf32> -> vector<16x256xf32>
    %321 = vector.extract_strided_slice %320 {offsets = [0, 128], sizes = [16, 128], strides = [1, 1]} : vector<16x256xf32> to vector<16x128xf32>
    %322 = arith.addf %321, %3 : vector<16x128xf32>
    %323 = arith.negf %322 : vector<16x128xf32>
    %324 = math.exp %323 : vector<16x128xf32>
    %cst_82 = arith.constant 1.000000e+00 : f32
    %325 = vector.broadcast %cst_82 : f32 to vector<16x128xf32>
    %326 = arith.addf %325, %324 : vector<16x128xf32>
    %327 = arith.divf %325, %326 : vector<16x128xf32>
    %328 = math.tanh %322 : vector<16x128xf32>
    %329 = vector.extract_strided_slice %327 {offsets = [0, 0], sizes = [16, 32], strides = [1, 1]} : vector<16x128xf32> to vector<16x32xf32>
    %330 = vector.extract_strided_slice %327 {offsets = [0, 32], sizes = [16, 32], strides = [1, 1]} : vector<16x128xf32> to vector<16x32xf32>
    %331 = vector.extract_strided_slice %328 {offsets = [0, 64], sizes = [16, 32], strides = [1, 1]} : vector<16x128xf32> to vector<16x32xf32>
    %332 = vector.extract_strided_slice %327 {offsets = [0, 96], sizes = [16, 32], strides = [1, 1]} : vector<16x128xf32> to vector<16x32xf32>
    %333 = arith.mulf %330, %294 : vector<16x32xf32>
    %334 = arith.mulf %329, %331 : vector<16x32xf32>
    %335 = arith.addf %333, %334 : vector<16x32xf32>
    %336 = math.tanh %335 : vector<16x32xf32>
    %337 = arith.mulf %332, %336 : vector<16x32xf32>
    %c0_83 = arith.constant 0 : index
    %c0_84 = arith.constant 0 : index
    %338 = vector.load %arg5[%c0_83, %c0_84] : memref<1x32xf32, #tpu.memory_space<vmem>>, vector<1x32xf32>
    %339 = vector.broadcast %338 : vector<1x32xf32> to vector<16x32xf32>
    %340 = arith.mulf %337, %339 : vector<16x32xf32>
    %cst_85 = arith.constant dense<0.000000e+00> : vector<16xf32>
    %341 = vector.multi_reduction <add>, %340, %cst_85 [1] : vector<16x32xf32> to vector<16xf32>
    %342 = vector.shape_cast %341 : vector<16xf32> to vector<16x1xf32>
    %c0_86 = arith.constant 0 : index
    %c0_87 = arith.constant 0 : index
    %343 = vector.load %arg6[%c0_86, %c0_87] : memref<1x1xf32, #tpu.memory_space<vmem>>, vector<1x1xf32>
    %344 = vector.broadcast %343 : vector<1x1xf32> to vector<16x1xf32>
    %345 = arith.addf %342, %344 : vector<16x1xf32>
    %c0_88 = arith.constant 0 : index
    %c0_89 = arith.constant 0 : index
    %346 = vector.load %arg7[%c0_88, %c0_89] : memref<16x1xf32, #tpu.memory_space<vmem>>, vector<16x1xf32>
    tpu.vector_store %arg7[%c0_88, %c0_89], %345 {strides = array<i32>} : memref<16x1xf32, #tpu.memory_space<vmem>>, vector<16x1xf32>,
    return
  }
}

</mosaic_0001>

<bundles_post_ra>
// kernel: tpu_custom_call.1
= control target key start
LH: loop header
LB: loop body
LE: loop exit
PB: predicated region body
PF: predicated region fallthrough
CT: control target
= control target key end

     0   :  { %vm133_vm0 = vcmask 1041408   ;;  %vm108_vm1 = vcmask 31744   ;;  %s1967_s9 = smov 32   ;;  %vm234_vm2 = vcmask 523264   ;;  %v1968_v32 = vmov 0   ;;  %s1969_s12 = smov 96   ;;  %s2519_s1 = inlined_call_operand.vmem [shape: bf16[4,128], index: 1, kind: input, shape index: {}]   ;;  %s2520_s0 = inlined_call_operand.vmem [shape: bf16[128,4], index: 0, kind: input, shape index: {}]   ;;  %s2521_s3 = inlined_call_operand.vmem [shape: f32[1,128], index: 3, kind: input, shape index: {}]   ;;  %s2522_s2 = inlined_call_operand.vmem [shape: bf16[64,256], index: 2, kind: input, shape index: {}]   ;;  %s2523_s4 = inlined_call_operand.vmem [shape: f32[1,128], index: 4, kind: input, shape index: {}]   ;;  %s2524_s5 = inlined_call_operand.vmem [shape: f32[1,32], index: 5, kind: input, shape index: {}]   ;;  %s2525_s6 = inlined_call_operand.<no memory space> [shape: f32[1,1], index: 6, kind: input, shape index: {}]   ;;  %s2526_s7 = inlined_call_operand.vmem [shape: f32[16,1], index: 7, kind: output, shape index: {}]  }
   0x1   :  { %v60_v0 = vld [vmem:[%s2519_s1] sm:$0x3]  ;;  %v1682_v3 = vld [vmem:[%s2520_s0 + $0x8] sm:$0xff]   ;;  %s1966_s1 = smov 64   ;;  %235 = vst.msk [vmem:[#allocation2] sm:$0xff] %vm234_vm2, %v1968_v32  ;;  %367 = vmatprep.mubr.bf16.mxu1 %v1968_v32  ;;  %vm289_vm3 = vcmask 261120  }
   0x2   :  { %1676 = vmatprep.subr.msk.bf16.mxu0 %vm133_vm0, %v60_v0  ;;  %v135_v1 = vsel %vm133_vm0, %v60_v0, 0  ;;  %v1681_v2 = vld [vmem:[%s2520_s0] sm:$0xff]   ;;  %v2059_v34 = vld [vmem:[%s2522_s2 + $0x14] ss:$8 sps:$4 sm:$0xff]   ;;  %v2064_v35 = vld [vmem:[%s2522_s2 + $0x10] ss:$8 sps:$4 sm:$0xff]  }
   0x3   :  { %1659 = vmatpush3.bf16.msra.mxu0 %v135_v1  ;;  %1660 = vmatprep.mubr.msk.bf16.mxu0 %vm108_vm1, %v1681_v2  ;;  %v2024_v4 = vld [vmem:[%s2521_s3] ss:$0 sm:$0xff]  ;;  %v2045_v31 = vld [vmem:[%s2522_s2 + $0x4] ss:$8 sps:$4 sm:$0xff]   ;;  %v2088_v40 = vld [vmem:[%s2522_s2 + $0x34] ss:$8 sps:$4 sm:$0xff]  }
   0x4   :  { %v2053_v33 = vld [vmem:[%s2522_s2] ss:$8 sps:$4 sm:$0xff]   ;;  %335 = vmatprep.subr.bf16.mxu1 %v2045_v31  ;;  %654 = vmatprep.subr.bf16.mxu0 %v2045_v31  ;;  %v2078_v38 = vld [vmem:[%s2522_s2 + $0x24] ss:$8 sps:$4 sm:$0xff]   ;;  %v2096_v41 = vld [vmem:[%s2522_s2 + $0x30] ss:$8 sps:$4 sm:$0xff]  }
   0x5   :  { %336 = vmatpush1.bf16.msra.mxu1 %v2053_v33  ;;  %v2083_v39 = vld [vmem:[%s2522_s2 + $0x20] ss:$8 sps:$4 sm:$0xff]   ;;  %vm489_vm4 = vcmask 523520   ;;  %vm1574_vm5 = vcmask 7168  }
   0x6   :  { %1661 = vmatmul.mubr.msk.bf16.vlgmr.msra.gmra.mrb[0].mxu0 %vm108_vm1, %v1682_v3  ;;  %337 = vmatprep.subr.bf16.mxu1 %v2059_v34  ;;  %v2122_v51 = vld [vmem:[%s2523_s4] ss:$0 sm:$0xff] }
   0x7   :  { %655 = vmatpush1.bf16.msra.mxu0 %v2053_v33 }
   0x8   :  { %656 = vmatprep.subr.bf16.mxu0 %v2059_v34 }
   0x9   :  { %338 = vmatpush1.bf16.msra.mxu1 %v2064_v35 }
   0xa   :  { %339 = vmatprep.subr.bf16.mxu1 %v2078_v38 }
   0xb   :  { %657 = vmatpush1.bf16.msra.mxu0 %v2064_v35 }
   0xc   :  { %658 = vmatprep.subr.bf16.mxu0 %v2078_v38 }
   0xd   :  { %340 = vmatpush1.bf16.msra.mxu1 %v2083_v39 }
   0xe   :  { %341 = vmatprep.subr.bf16.mxu1 %v2088_v40 }
   0xf   :  { %659 = vmatpush1.bf16.msra.mxu0 %v2083_v39 }
  0x10   :  { %660 = vmatprep.subr.bf16.mxu0 %v2088_v40 }
  0x11   :  { %342 = vmatpush1.bf16.msra.mxu1 %v2096_v41 }
  0x12   :  { %495 = vmatprep.subr.bf16.mxu1 %v2045_v31 }
  0x13   :  { %661 = vmatpush1.bf16.msra.mxu0 %v2096_v41 }
  0x14   :  { %972 = vmatprep.subr.bf16.mxu0 %v2045_v31 }
  0xd9   :  { %v2026_v5 = vpop.f32.mrb[0].mxu0 }
  0xda   :  { %v171_v6 = vpop.f32.mrb[1].mxu0  ;;  %v180_v49 = vadd.f32 %v2026_v5, %v2024_v4 }
  0xdb   :  { %v172_v7 = vadd.f32 %v2024_v4, %v171_v6  ;;  %v2029_v8 = vpop.f32.mrb[2].mxu0 }
  0xdc   :  { %v174_v9 = vpop.f32.mrb[3].mxu0  ;;  %v183_v52 = vadd.f32 %v2029_v8, %v2024_v4 }
  0xdd   :  { %1701 = vtanh.f32 %v172_v7  ;;  %v175_v10 = vadd.f32 %v2024_v4, %v174_v9  ;;  %v1599_v13 = vmul.f32 -1.442695, %v172_v7 }
  0xdf   :  { %1703 = vtanh.f32 %v175_v10  ;;  %v1600_v14 = vmul.f32 -1.442695, %v175_v10 }
  0xe0   :  { %1705 = vpow2.f32 %v1599_v13 }
  0xe1   :  { %1707 = vpow2.f32 %v1600_v14 }
  0xe7   :  { %v1702_v11 = vpop.eup %1701 }
  0xe8   :  { %254 = vrot.lane.b32.xlu0 %v1702_v11, %s1966_s1 }
  0xe9   :  { %v1704_v12 = vpop.eup %1703 }
  0xea   :  { %v1706_v15 = vpop.eup %1705 }
  0xeb   :  { %v242_v16 = vadd.f32 1.0, %v1706_v15  ;;  %v1708_v17 = vpop.eup %1707 }
  0xec   :  { %256 = vrot.lane.b32.xlu0 %v1704_v12, %s1966_s1  ;;  %v243_v18 = vadd.f32 1.0, %v1708_v17 }
  0xed   :  { %1709 = vrcp.f32 %v242_v16 }
  0xee   :  { %1711 = vrcp.f32 %v243_v18 }
  0xf7   :  { %v1710_v19 = vpop.eup %1709 }
  0xf8   :  { %v1712_v22 = vpop.eup %1711  ;;  %v250_v25 = vmul.f32 0.0, %v1710_v19 }
  0xf9   :  { %v251_v28 = vmul.f32 0.0, %v1712_v22 }
 0x15a   :  { %v255_v20 = vpop.permute.xlu0 %254 }
 0x15b   :  { %v260_v21 = vmul.f32 %v1710_v19, %v255_v20 }
 0x15d   :  { %264 = vrot.lane.b32.xlu1 %v260_v21, %s1967_s9 }
 0x15e   :  { %v257_v23 = vpop.permute.xlu0 %256 }
 0x15f   :  { %v261_v24 = vmul.f32 %v1712_v22, %v257_v23 }
 0x161   :  { %266 = vrot.lane.b32.xlu1 %v261_v24, %s1967_s9 }
 0x1cf   :  { %v265_v26 = vpop.permute.xlu1 %264 }
 0x1d0   :  { %v2036_v27 = vadd.f32 %v265_v26, %v250_v25 }
 0x1d2   :  { %1713 = vtanh.f32 %v2036_v27 }
 0x1d3   :  { %v267_v29 = vpop.permute.xlu1 %266 }
 0x1d4   :  { %v2039_v30 = vadd.f32 %v267_v29, %v251_v28 }
 0x1d6   :  { %1715 = vtanh.f32 %v2039_v30 }
 0x1dc   :  { %v1714_v36 = vpop.eup %1713 }
 0x1dd   :  { %276 = vrot.lane.b32.xlu0 %v1714_v36, %s1966_s1 }
 0x1e0   :  { %v1716_v37 = vpop.eup %1715 }
 0x1e1   :  { %278 = vrot.lane.b32.xlu1 %v1716_v37, %s1966_s1 }
 0x24f   :  { %v277_v42 = vpop.permute.xlu0 %276 }
 0x250   :  { %v282_v44 = vmul.f32 %v1710_v19, %v277_v42 }
 0x253   :  { %v279_v43 = vpop.permute.xlu1 %278 }
 0x254   :  { %v283_v45 = vmul.f32 %v1712_v22, %v279_v43 }
 0x256   :  { %v284_v46 = vpack.c.bf16 %v283_v45, %v282_v44 }
 0x258   :  { %286 = vrot.lane.b32.xlu0 %v284_v46, %s1967_s9 }
 0x2ca   :  { %v287_v47 = vpop.permute.xlu0 %286 }
 0x2cb   :  { %290 = vst.msk [vmem:[#allocation2] sm:$0xff] %vm289_vm3, %v287_v47 }
 0x2d2   :  { %v291_v48 = vld [vmem:[#allocation2] sm:$0xff] }
 0x2d3   :  { %1609 = vmatmul.mubr.msk.bf16.vlgmr.msra.gmra.mrb[0].mxu1 %vm234_vm2, %v291_v48 }
 0x2d4   :  { %496 = vmatpush1.bf16.msra.mxu1 %v2053_v33  ;;  %527 = vmatprep.mubr.bf16.mxu1 %v1968_v32 }
 0x2d5   :  { %497 = vmatprep.subr.bf16.mxu1 %v2059_v34 }
 0x2d8   :  { %498 = vmatpush1.bf16.msra.mxu1 %v2064_v35 }
 0x2d9   :  { %499 = vmatprep.subr.bf16.mxu1 %v2078_v38 }
 0x2dc   :  { %500 = vmatpush1.bf16.msra.mxu1 %v2083_v39 }
 0x2dd   :  { %501 = vmatprep.subr.bf16.mxu1 %v2088_v40 }
 0x2e0   :  { %502 = vmatpush1.bf16.msra.mxu1 %v2096_v41 }
 0x2e1   :  { %813 = vmatprep.subr.bf16.mxu1 %v2045_v31 }
 0x3a6   :  { %v369_v50 = vpop.f32.mrb[0].mxu1 }
 0x3a7   :  { %v428_v53 = vadd.f32 %v369_v50, %v180_v49  ;;  %v371_v54 = vpop.f32.mrb[1].mxu1 }
 0x3a8   :  { %v373_v55 = vpop.f32.mrb[2].mxu1  ;;  %v378_v56 = vadd.f32 %v2122_v51, %v371_v54 }
 0x3a9   :  { %1717 = vtanh.f32 %v428_v53  ;;  %v429_v57 = vadd.f32 %v373_v55, %v183_v52  ;;  %v375_v58 = vpop.f32.mrb[3].mxu1  ;;  %v1612_v0 = vmul.f32 -1.442695, %v428_v53  ;;  %v1695_v52 = vld [vmem:[%s2520_s0 + $0x10] sm:$0xff]   ;;  %v1696_v53 = vld [vmem:[%s2520_s0 + $0x18] sm:$0xff]  }
 0x3aa   :  { %1719 = vtanh.f32 %v378_v56  ;;  %v379_v59 = vadd.f32 %v2122_v51, %v375_v58  ;;  %v1610_v1 = vmul.f32 -1.442695, %v378_v56  ;;  %1664 = vmatprep.mubr.msk.bf16.mxu0 %vm108_vm1, %v1695_v52 }
 0x3ab   :  { %1721 = vtanh.f32 %v429_v57  ;;  %v1613_v2 = vmul.f32 -1.442695, %v429_v57  ;;  %1665 = vmatmul.mubr.msk.bf16.gmra.mrb[4].mxu0 %vm108_vm1, %v1696_v53 }
 0x3ac   :  { %1723 = vtanh.f32 %v379_v59  ;;  %v1611_v3 = vmul.f32 -1.442695, %v379_v59 }
 0x3ad   :  { %1725 = vpow2.f32 %v1612_v0 }
 0x3ae   :  { %1727 = vpow2.f32 %v1610_v1 }
 0x3af   :  { %1729 = vpow2.f32 %v1613_v2 }
 0x3b0   :  { %1731 = vpow2.f32 %v1611_v3 }
 0x3b3   :  { %v1718_v60 = vpop.eup %1717 }
 0x3b4   :  { %448 = vrot.lane.b32.xlu1 %v1718_v60, %s1966_s1  ;;  %v1720_v61 = vpop.eup %1719 }
 0x3b5   :  { %v1722_v62 = vpop.eup %1721 }
 0x3b6   :  { %450 = vrot.lane.b32.xlu0 %v1722_v62, %s1966_s1  ;;  %v1724_v63 = vpop.eup %1723 }
 0x3b7   :  { %v1726_v5 = vpop.eup %1725 }
 0x3b8   :  { %398 = vrot.lane.b32.xlu1 %v1720_v61, %s1966_s1  ;;  %v436_v6 = vadd.f32 1.0, %v1726_v5  ;;  %v1728_v7 = vpop.eup %1727 }
 0x3b9   :  { %v1730_v8 = vpop.eup %1729  ;;  %v386_v9 = vadd.f32 1.0, %v1728_v7 }
 0x3ba   :  { %400 = vrot.lane.b32.xlu0 %v1724_v63, %s1966_s1  ;;  %1733 = vrcp.f32 %v436_v6  ;;  %v437_v10 = vadd.f32 1.0, %v1730_v8  ;;  %v1732_v11 = vpop.eup %1731 }
 0x3bb   :  { %1735 = vrcp.f32 %v386_v9  ;;  %v387_v12 = vadd.f32 1.0, %v1732_v11 }
 0x3bc   :  { %1737 = vrcp.f32 %v437_v10 }
 0x3bd   :  { %1739 = vrcp.f32 %v387_v12 }
 0x3c4   :  { %v1734_v13 = vpop.eup %1733 }
 0x3c5   :  { %v1736_v16 = vpop.eup %1735  ;;  %v444_v25 = vmul.f32 %v1734_v13, %v2036_v27 }
 0x3c6   :  { %v1738_v18 = vpop.eup %1737  ;;  %v394_v29 = vmul.f32 0.0, %v1736_v16 }
 0x3c7   :  { %v1740_v22 = vpop.eup %1739  ;;  %v445_v36 = vmul.f32 %v1738_v18, %v2039_v30 }
 0x3c8   :  { %v395_v45 = vmul.f32 0.0, %v1740_v22 }
 0x426   :  { %v449_v14 = vpop.permute.xlu1 %448 }
 0x427   :  { %v454_v15 = vmul.f32 %v1734_v13, %v449_v14 }
 0x428   :  { %v451_v19 = vpop.permute.xlu0 %450 }
 0x429   :  { %458 = vrot.lane.b32.xlu1 %v454_v15, %s1967_s9  ;;  %v455_v21 = vmul.f32 %v1738_v18, %v451_v19 }
 0x42a   :  { %v399_v17 = vpop.permute.xlu1 %398 }
 0x42b   :  { %v404_v20 = vmul.f32 %v1736_v16, %v399_v17  ;;  %460 = vrot.lane.b32.xlu0 %v455_v21, %s1967_s9 }
 0x42c   :  { %v401_v23 = vpop.permute.xlu0 %400 }
 0x42d   :  { %408 = vrot.lane.b32.xlu1 %v404_v20, %s1967_s9  ;;  %v405_v24 = vmul.f32 %v1740_v22, %v401_v23 }
 0x42f   :  { %410 = vrot.lane.b32.xlu0 %v405_v24, %s1967_s9 }
 0x47e   :  { %v2176_v2 = vpop.f32.mrb[4].mxu0 }
 0x47f   :  { %v187_v3 = vpop.f32.mrb[5].mxu0 }
 0x480   :  { %v2178_v5 = vpop.f32.mrb[6].mxu0  ;;  %v188_v7 = vadd.f32 %v2024_v4, %v187_v3 }
 0x481   :  { %v190_v6 = vpop.f32.mrb[7].mxu0 }
 0x482   :  { %v191_v9 = vadd.f32 %v2024_v4, %v190_v6 }
 0x49b   :  { %v459_v26 = vpop.permute.xlu1 %458 }
 0x49c   :  { %v2137_v28 = vadd.f32 %v459_v26, %v444_v25 }
 0x49d   :  { %v461_v42 = vpop.permute.xlu0 %460 }
 0x49e   :  { %1741 = vtanh.f32 %v2137_v28  ;;  %v2143_v44 = vadd.f32 %v461_v42, %v445_v36 }
 0x49f   :  { %v409_v37 = vpop.permute.xlu1 %408 }
 0x4a0   :  { %v2141_v43 = vadd.f32 %v409_v37, %v394_v29 }
 0x4a1   :  { %v411_v27 = vpop.permute.xlu0 %410 }
 0x4a2   :  { %1743 = vtanh.f32 %v2141_v43  ;;  %v2147_v46 = vadd.f32 %v411_v27, %v395_v45 }
 0x4a3   :  { %1745 = vtanh.f32 %v2143_v44 }
 0x4a4   :  { %1747 = vtanh.f32 %v2147_v46 }
 0x4a8   :  { %v1742_v47 = vpop.eup %1741 }
 0x4a9   :  { %470 = vrot.lane.b32.xlu1 %v1742_v47, %s1966_s1 }
 0x4ac   :  { %v1744_v30 = vpop.eup %1743 }
 0x4ad   :  { %v1746_v48 = vpop.eup %1745  ;;  %420 = vrot.lane.b32.xlu1 %v1744_v30, %s1966_s1 }
 0x4ae   :  { %472 = vrot.lane.b32.xlu0 %v1746_v48, %s1966_s1  ;;  %v1748_v49 = vpop.eup %1747 }
 0x4b2   :  { %422 = vrot.lane.b32.xlu0 %v1748_v49, %s1966_s1 }
 0x51b   :  { %v471_v50 = vpop.permute.xlu1 %470 }
 0x51c   :  { %v476_v55 = vmul.f32 %v1734_v13, %v471_v50 }
 0x51f   :  { %v421_v57 = vpop.permute.xlu1 %420 }
 0x520   :  { %v473_v54 = vpop.permute.xlu0 %472  ;;  %v426_v60 = vmul.f32 %v1736_v16, %v421_v57 }
 0x521   :  { %v477_v56 = vmul.f32 %v1738_v18, %v473_v54 }
 0x523   :  { %v478_v58 = vpack.c.bf16 %v477_v56, %v476_v55 }
 0x524   :  { %v423_v59 = vpop.permute.xlu0 %422 }
 0x525   :  { %v427_v61 = vmul.f32 %v1740_v22, %v423_v59  ;;  %480 = vrot.lane.b32.xlu1 %v478_v58, %s1967_s9 }
 0x527   :  { %v484_v62 = vpack.c.bf16 %v427_v61, %v426_v60 }
 0x529   :  { %486 = vrot.lane.b32.xlu0 %v484_v62, %s1966_s1 }
 0x597   :  { %v481_v63 = vpop.permute.xlu1 %480 }
 0x598   :  { %483 = vst.msk [vmem:[#allocation2] sm:$0xff] %vm289_vm3, %v481_v63 }
 0x59b   :  { %v487_v0 = vpop.permute.xlu0 %486 }
 0x59c   :  { %490 = vst.msk [vmem:[#allocation2] sm:$0xff] %vm489_vm4, %v487_v0 }
 0x5a3   :  { %v491_v1 = vld [vmem:[#allocation2] sm:$0xff] }
 0x5a4   :  { %1614 = vmatmul.mubr.msk.bf16.vlgmr.msra.gmra.mrb[4].mxu1 %vm234_vm2, %v491_v1 }
 0x5a5   :  { %814 = vmatpush1.bf16.msra.mxu1 %v2053_v33  ;;  %845 = vmatprep.mubr.bf16.mxu1 %v1968_v32 }
 0x5a6   :  { %815 = vmatprep.subr.bf16.mxu1 %v2059_v34 }
 0x5a9   :  { %816 = vmatpush1.bf16.msra.mxu1 %v2064_v35 }
 0x5aa   :  { %817 = vmatprep.subr.bf16.mxu1 %v2078_v38 }
 0x5ad   :  { %818 = vmatpush1.bf16.msra.mxu1 %v2083_v39 }
 0x5ae   :  { %819 = vmatprep.subr.bf16.mxu1 %v2088_v40 }
 0x5b1   :  { %820 = vmatpush1.bf16.msra.mxu1 %v2096_v41 }
 0x5b2   :  { %1131 = vmatprep.subr.bf16.mxu1 %v2045_v31 }
 0x677   :  { %v529_v8 = vpop.f32.mrb[4].mxu1 }
 0x678   :  { %v588_v10 = vadd.f32 %v529_v8, %v188_v7  ;;  %v531_v11 = vpop.f32.mrb[5].mxu1 }
 0x679   :  { %v533_v12 = vpop.f32.mrb[6].mxu1  ;;  %v538_v13 = vadd.f32 %v2122_v51, %v531_v11 }
 0x67a   :  { %1749 = vtanh.f32 %v588_v10  ;;  %v589_v14 = vadd.f32 %v533_v12, %v191_v9  ;;  %v535_v15 = vpop.f32.mrb[7].mxu1  ;;  %v1617_v21 = vmul.f32 -1.442695, %v588_v10  ;;  %v1698_v9 = vld [vmem:[%s2520_s0 + $0x28] sm:$0xff]   ;;  %v1699_v12 = vld [vmem:[%s2520_s0 + $0x30] sm:$0xff]  }
 0x67b   :  { %1751 = vtanh.f32 %v538_v13  ;;  %v539_v16 = vadd.f32 %v2122_v51, %v535_v15  ;;  %v1615_v22 = vmul.f32 -1.442695, %v538_v13  ;;  %v1700_v13 = vld [vmem:[%s2520_s0 + $0x38] sm:$0xff]  }
 0x67c   :  { %1753 = vtanh.f32 %v589_v14  ;;  %v1618_v23 = vmul.f32 -1.442695, %v589_v14 }
 0x67d   :  { %1755 = vtanh.f32 %v539_v16  ;;  %v1616_v24 = vmul.f32 -1.442695, %v539_v16 }
 0x67e   :  { %1757 = vpow2.f32 %v1617_v21 }
 0x67f   :  { %1759 = vpow2.f32 %v1615_v22 }
 0x680   :  { %1761 = vpow2.f32 %v1618_v23 }
 0x681   :  { %1763 = vpow2.f32 %v1616_v24 }
 0x684   :  { %v1750_v17 = vpop.eup %1749 }
 0x685   :  { %608 = vrot.lane.b32.xlu1 %v1750_v17, %s1966_s1  ;;  %v1752_v18 = vpop.eup %1751 }
 0x686   :  { %v1754_v19 = vpop.eup %1753 }
 0x687   :  { %610 = vrot.lane.b32.xlu0 %v1754_v19, %s1966_s1  ;;  %v1756_v20 = vpop.eup %1755 }
 0x688   :  { %v1758_v25 = vpop.eup %1757 }
 0x689   :  { %558 = vrot.lane.b32.xlu1 %v1752_v18, %s1966_s1  ;;  %v596_v26 = vadd.f32 1.0, %v1758_v25  ;;  %v1760_v29 = vpop.eup %1759 }
 0x68a   :  { %v1762_v36 = vpop.eup %1761  ;;  %v546_v37 = vadd.f32 1.0, %v1760_v29 }
 0x68b   :  { %560 = vrot.lane.b32.xlu0 %v1756_v20, %s1966_s1  ;;  %1765 = vrcp.f32 %v596_v26  ;;  %v597_v42 = vadd.f32 1.0, %v1762_v36  ;;  %v1764_v45 = vpop.eup %1763 }
 0x68c   :  { %1767 = vrcp.f32 %v546_v37  ;;  %v547_v27 = vadd.f32 1.0, %v1764_v45 }
 0x68d   :  { %1769 = vrcp.f32 %v597_v42 }
 0x68e   :  { %1771 = vrcp.f32 %v547_v27 }
 0x695   :  { %v1766_v47 = vpop.eup %1765 }
 0x696   :  { %v1768_v49 = vpop.eup %1767  ;;  %v604_v59 = vmul.f32 %v1766_v47, %v2137_v28 }
 0x697   :  { %v1770_v52 = vpop.eup %1769  ;;  %v554_v62 = vmul.f32 %v1768_v49, %v2141_v43 }
 0x698   :  { %v1772_v56 = vpop.eup %1771  ;;  %v605_v63 = vmul.f32 %v1770_v52, %v2143_v44  ;;  %v1697_v44 = vld [vmem:[%s2520_s0 + $0x20] sm:$0xff]  }
 0x699   :  { %v555_v28 = vmul.f32 %v1772_v56, %v2147_v46  ;;  %1668 = vmatprep.mubr.msk.bf16.mxu0 %vm108_vm1, %v1697_v44 }
 0x69a   :  { %1669 = vmatmul.mubr.msk.bf16.gmra.mrb[8].mxu0 %vm108_vm1, %v1698_v9 }
 0x69b   :  { %1672 = vmatprep.mubr.msk.bf16.mxu0 %vm108_vm1, %v1699_v12 }
 0x6a2   :  { %1673 = vmatmul.mubr.msk.bf16.gmra.mrb[12].mxu0 %vm108_vm1, %v1700_v13 }
 0x6a3   :  { %686 = vmatprep.mubr.bf16.mxu0 %v1968_v32 }
 0x6f7   :  { %v609_v30 = vpop.permute.xlu1 %608 }
 0x6f8   :  { %v614_v48 = vmul.f32 %v1766_v47, %v609_v30 }
 0x6f9   :  { %v611_v53 = vpop.permute.xlu0 %610 }
 0x6fa   :  { %618 = vrot.lane.b32.xlu1 %v614_v48, %s1967_s9  ;;  %v615_v55 = vmul.f32 %v1770_v52, %v611_v53  ;;  %v196_v48 = vadd.f32 %v2176_v2, %v2024_v4 }
 0x6fb   :  { %v559_v50 = vpop.permute.xlu1 %558 }
 0x6fc   :  { %v564_v54 = vmul.f32 %v1768_v49, %v559_v50  ;;  %620 = vrot.lane.b32.xlu0 %v615_v55, %s1967_s9  ;;  %v199_v50 = vadd.f32 %v2178_v5, %v2024_v4 }
 0x6fd   :  { %v561_v57 = vpop.permute.xlu0 %560 }
 0x6fe   :  { %568 = vrot.lane.b32.xlu1 %v564_v54, %s1967_s9  ;;  %v565_v58 = vmul.f32 %v1772_v56, %v561_v57 }
 0x700   :  { %570 = vrot.lane.b32.xlu0 %v565_v58, %s1967_s9 }
 0x76c   :  { %v619_v60 = vpop.permute.xlu1 %618 }
 0x76d   :  { %v2193_v61 = vadd.f32 %v619_v60, %v604_v59  ;;  %v2231_v24 = vpop.f32.mrb[8].mxu0 }
 0x76e   :  { %v621_v1 = vpop.permute.xlu0 %620  ;;  %v2233_v25 = vpop.f32.mrb[9].mxu0 }
 0x76f   :  { %1773 = vtanh.f32 %v2193_v61  ;;  %v2200_v6 = vadd.f32 %v621_v1, %v605_v63  ;;  %v2235_v26 = vpop.f32.mrb[10].mxu0 }
 0x770   :  { %v569_v0 = vpop.permute.xlu1 %568  ;;  %v2237_v29 = vpop.f32.mrb[11].mxu0 }
 0x771   :  { %v2198_v3 = vadd.f32 %v569_v0, %v554_v62 }
 0x772   :  { %v571_v7 = vpop.permute.xlu0 %570 }
 0x773   :  { %1775 = vtanh.f32 %v2198_v3  ;;  %v2205_v8 = vadd.f32 %v571_v7, %v555_v28 }
 0x774   :  { %1777 = vtanh.f32 %v2200_v6 }
 0x775   :  { %1779 = vtanh.f32 %v2205_v8  ;;  %v2251_v45 = vpop.f32.mrb[12].mxu0 }
 0x776   :  { %v2253_v27 = vpop.f32.mrb[13].mxu0 }
 0x779   :  { %v1774_v43 = vpop.eup %1773 }
 0x77a   :  { %630 = vrot.lane.b32.xlu1 %v1774_v43, %s1966_s1 }
 0x77d   :  { %v1776_v10 = vpop.eup %1775 }
 0x77e   :  { %v1778_v46 = vpop.eup %1777  ;;  %580 = vrot.lane.b32.xlu1 %v1776_v10, %s1966_s1 }
 0x77f   :  { %632 = vrot.lane.b32.xlu0 %v1778_v46, %s1966_s1  ;;  %v1780_v11 = vpop.eup %1779 }
 0x783   :  { %582 = vrot.lane.b32.xlu0 %v1780_v11, %s1966_s1 }
 0x7ec   :  { %v631_v14 = vpop.permute.xlu1 %630 }
 0x7ed   :  { %v636_v16 = vmul.f32 %v1766_v47, %v631_v14  ;;  %v2255_v47 = vpop.f32.mrb[14].mxu0 }
 0x7ee   :  { %v2257_v30 = vpop.f32.mrb[15].mxu0 }
 0x7f0   :  { %v581_v18 = vpop.permute.xlu1 %580 }
 0x7f1   :  { %v633_v15 = vpop.permute.xlu0 %632  ;;  %v586_v21 = vmul.f32 %v1768_v49, %v581_v18 }
 0x7f2   :  { %v637_v17 = vmul.f32 %v1770_v52, %v633_v15 }
 0x7f4   :  { %v638_v19 = vpack.c.bf16 %v637_v17, %v636_v16 }
 0x7f5   :  { %v583_v20 = vpop.permute.xlu0 %582 }
 0x7f6   :  { %v587_v22 = vmul.f32 %v1772_v56, %v583_v20  ;;  %640 = vrot.lane.b32.xlu1 %v638_v19, %s1967_s9 }
 0x7f8   :  { %v644_v23 = vpack.c.bf16 %v587_v22, %v586_v21 }
 0x7fa   :  { %646 = vrot.lane.b32.xlu0 %v644_v23, %s1966_s1 }
 0x868   :  { %v641_v36 = vpop.permute.xlu1 %640 }
 0x869   :  { %643 = vst.msk [vmem:[#allocation2] sm:$0xff] %vm289_vm3, %v641_v36 }
 0x86c   :  { %v647_v37 = vpop.permute.xlu0 %646 }
 0x86d   :  { %649 = vst.msk [vmem:[#allocation2] sm:$0xff] %vm489_vm4, %v647_v37 }
 0x874   :  { %v650_v42 = vld [vmem:[#allocation2] sm:$0xff] }
 0x875   :  { %1619 = vmatmul.mubr.msk.bf16.vlgmr.msra.gmra.mrb[16].mxu0 %vm234_vm2, %v650_v42 }
 0x876   :  { %973 = vmatpush1.bf16.msra.mxu0 %v2053_v33  ;;  %1004 = vmatprep.mubr.bf16.mxu0 %v1968_v32 }
 0x877   :  { %974 = vmatprep.subr.bf16.mxu0 %v2059_v34 }
 0x87a   :  { %975 = vmatpush1.bf16.msra.mxu0 %v2064_v35 }
 0x87b   :  { %976 = vmatprep.subr.bf16.mxu0 %v2078_v38 }
 0x87e   :  { %977 = vmatpush1.bf16.msra.mxu0 %v2083_v39 }
 0x87f   :  { %978 = vmatprep.subr.bf16.mxu0 %v2088_v40 }
 0x882   :  { %979 = vmatpush1.bf16.msra.mxu0 %v2096_v41 }
 0x883   :  { %1290 = vmatprep.subr.bf16.mxu0 %v2045_v31 }
 0x948   :  { %v688_v49 = vpop.f32.mrb[16].mxu0 }
 0x949   :  { %v747_v52 = vadd.f32 %v688_v49, %v196_v48  ;;  %v690_v53 = vpop.f32.mrb[17].mxu0 }
 0x94a   :  { %v692_v54 = vpop.f32.mrb[18].mxu0  ;;  %v697_v55 = vadd.f32 %v2122_v51, %v690_v53 }
 0x94b   :  { %1781 = vtanh.f32 %v747_v52  ;;  %v748_v56 = vadd.f32 %v692_v54, %v199_v50  ;;  %v694_v57 = vpop.f32.mrb[19].mxu0  ;;  %v1622_v62 = vmul.f32 -1.442695, %v747_v52 }
 0x94c   :  { %1783 = vtanh.f32 %v697_v55  ;;  %v698_v58 = vadd.f32 %v2122_v51, %v694_v57  ;;  %v1620_v63 = vmul.f32 -1.442695, %v697_v55 }
 0x94d   :  { %1785 = vtanh.f32 %v748_v56  ;;  %v1623_v0 = vmul.f32 -1.442695, %v748_v56 }
 0x94e   :  { %1787 = vtanh.f32 %v698_v58  ;;  %v1621_v1 = vmul.f32 -1.442695, %v698_v58 }
 0x94f   :  { %1789 = vpow2.f32 %v1622_v62 }
 0x950   :  { %1791 = vpow2.f32 %v1620_v63 }
 0x951   :  { %1793 = vpow2.f32 %v1623_v0 }
 0x952   :  { %1795 = vpow2.f32 %v1621_v1 }
 0x955   :  { %v1782_v59 = vpop.eup %1781 }
 0x956   :  { %767 = vrot.lane.b32.xlu1 %v1782_v59, %s1966_s1  ;;  %v1784_v2 = vpop.eup %1783 }
 0x957   :  { %v1786_v60 = vpop.eup %1785 }
 0x958   :  { %769 = vrot.lane.b32.xlu0 %v1786_v60, %s1966_s1  ;;  %v1788_v5 = vpop.eup %1787 }
 0x959   :  { %v1790_v28 = vpop.eup %1789 }
 0x95a   :  { %717 = vrot.lane.b32.xlu1 %v1784_v2, %s1966_s1  ;;  %v755_v7 = vadd.f32 1.0, %v1790_v28  ;;  %v1792_v43 = vpop.eup %1791 }
 0x95b   :  { %v1794_v44 = vpop.eup %1793  ;;  %v705_v9 = vadd.f32 1.0, %v1792_v43 }
 0x95c   :  { %719 = vrot.lane.b32.xlu0 %v1788_v5, %s1966_s1  ;;  %1797 = vrcp.f32 %v755_v7  ;;  %v756_v10 = vadd.f32 1.0, %v1794_v44  ;;  %v1796_v46 = vpop.eup %1795 }
 0x95d   :  { %1799 = vrcp.f32 %v705_v9  ;;  %v706_v11 = vadd.f32 1.0, %v1796_v46  ;;  %v204_v9 = vadd.f32 %v2024_v4, %v2233_v25  ;;  %v207_v46 = vadd.f32 %v2024_v4, %v2237_v29 }
 0x95e   :  { %1801 = vrcp.f32 %v756_v10 }
 0x95f   :  { %1803 = vrcp.f32 %v706_v11 }
 0x966   :  { %v1798_v12 = vpop.eup %1797 }
 0x967   :  { %v1800_v15 = vpop.eup %1799  ;;  %v763_v36 = vmul.f32 %v1798_v12, %v2193_v61 }
 0x968   :  { %v1802_v17 = vpop.eup %1801  ;;  %v713_v48 = vmul.f32 %v1800_v15, %v2198_v3 }
 0x969   :  { %v1804_v21 = vpop.eup %1803  ;;  %v764_v49 = vmul.f32 %v1802_v17, %v2200_v6 }
 0x96a   :  { %v714_v61 = vmul.f32 %v1804_v21, %v2205_v8 }
 0x9c8   :  { %v768_v13 = vpop.permute.xlu1 %767 }
 0x9c9   :  { %v773_v14 = vmul.f32 %v1798_v12, %v768_v13 }
 0x9ca   :  { %v770_v18 = vpop.permute.xlu0 %769 }
 0x9cb   :  { %777 = vrot.lane.b32.xlu1 %v773_v14, %s1967_s9  ;;  %v774_v20 = vmul.f32 %v1802_v17, %v770_v18 }
 0x9cc   :  { %v718_v16 = vpop.permute.xlu1 %717 }
 0x9cd   :  { %v723_v19 = vmul.f32 %v1800_v15, %v718_v16  ;;  %779 = vrot.lane.b32.xlu0 %v774_v20, %s1967_s9 }
 0x9ce   :  { %v720_v22 = vpop.permute.xlu0 %719 }
 0x9cf   :  { %727 = vrot.lane.b32.xlu1 %v723_v19, %s1967_s9  ;;  %v724_v23 = vmul.f32 %v1804_v21, %v720_v22 }
 0x9d1   :  { %729 = vrot.lane.b32.xlu0 %v724_v23, %s1967_s9 }
 0xa3d   :  { %v778_v37 = vpop.permute.xlu1 %777 }
 0xa3e   :  { %v2274_v42 = vadd.f32 %v778_v37, %v763_v36 }
 0xa3f   :  { %v780_v52 = vpop.permute.xlu0 %779 }
 0xa40   :  { %1805 = vtanh.f32 %v2274_v42  ;;  %v2281_v54 = vadd.f32 %v780_v52, %v764_v49 }
 0xa41   :  { %v728_v50 = vpop.permute.xlu1 %727 }
 0xa42   :  { %v2279_v53 = vadd.f32 %v728_v50, %v713_v48 }
 0xa43   :  { %v730_v55 = vpop.permute.xlu0 %729 }
 0xa44   :  { %1807 = vtanh.f32 %v2279_v53  ;;  %v2286_v56 = vadd.f32 %v730_v55, %v714_v61 }
 0xa45   :  { %1809 = vtanh.f32 %v2281_v54 }
 0xa46   :  { %1811 = vtanh.f32 %v2286_v56 }
 0xa4a   :  { %v1806_v3 = vpop.eup %1805 }
 0xa4b   :  { %789 = vrot.lane.b32.xlu1 %v1806_v3, %s1966_s1 }
 0xa4e   :  { %v1808_v6 = vpop.eup %1807 }
 0xa4f   :  { %v1810_v57 = vpop.eup %1809  ;;  %739 = vrot.lane.b32.xlu1 %v1808_v6, %s1966_s1 }
 0xa50   :  { %791 = vrot.lane.b32.xlu0 %v1810_v57, %s1966_s1  ;;  %v1812_v58 = vpop.eup %1811 }
 0xa54   :  { %741 = vrot.lane.b32.xlu0 %v1812_v58, %s1966_s1 }
 0xabd   :  { %v790_v59 = vpop.permute.xlu1 %789 }
 0xabe   :  { %v795_v8 = vmul.f32 %v1798_v12, %v790_v59 }
 0xac1   :  { %v740_v5 = vpop.permute.xlu1 %739 }
 0xac2   :  { %v792_v2 = vpop.permute.xlu0 %791  ;;  %v745_v0 = vmul.f32 %v1800_v15, %v740_v5 }
 0xac3   :  { %v796_v60 = vmul.f32 %v1802_v17, %v792_v2 }
 0xac5   :  { %v797_v62 = vpack.c.bf16 %v796_v60, %v795_v8 }
 0xac6   :  { %v742_v63 = vpop.permute.xlu0 %741 }
 0xac7   :  { %v746_v1 = vmul.f32 %v1804_v21, %v742_v63  ;;  %799 = vrot.lane.b32.xlu1 %v797_v62, %s1967_s9 }
 0xac9   :  { %v803_v28 = vpack.c.bf16 %v746_v1, %v745_v0 }
 0xacb   :  { %805 = vrot.lane.b32.xlu0 %v803_v28, %s1966_s1 }
 0xb39   :  { %v800_v7 = vpop.permute.xlu1 %799 }
 0xb3a   :  { %802 = vst.msk [vmem:[#allocation2] sm:$0xff] %vm289_vm3, %v800_v7 }
 0xb3d   :  { %v806_v43 = vpop.permute.xlu0 %805 }
 0xb3e   :  { %808 = vst.msk [vmem:[#allocation2] sm:$0xff] %vm489_vm4, %v806_v43 }
 0xb45   :  { %v809_v44 = vld [vmem:[#allocation2] sm:$0xff] }
 0xb46   :  { %1624 = vmatmul.mubr.msk.bf16.vlgmr.msra.gmra.mrb[8].mxu1 %vm234_vm2, %v809_v44 }
 0xb47   :  { %1132 = vmatpush1.bf16.msra.mxu1 %v2053_v33  ;;  %1163 = vmatprep.mubr.bf16.mxu1 %v1968_v32 }
 0xb48   :  { %1133 = vmatprep.subr.bf16.mxu1 %v2059_v34 }
 0xb4b   :  { %1134 = vmatpush1.bf16.msra.mxu1 %v2064_v35 }
 0xb4c   :  { %1135 = vmatprep.subr.bf16.mxu1 %v2078_v38 }
 0xb4f   :  { %1136 = vmatpush1.bf16.msra.mxu1 %v2083_v39 }
 0xb50   :  { %1137 = vmatprep.subr.bf16.mxu1 %v2088_v40 }
 0xb53   :  { %1138 = vmatpush1.bf16.msra.mxu1 %v2096_v41 }
 0xb54   :  { %1449 = vmatprep.subr.bf16.mxu1 %v2045_v31 }
 0xc19   :  { %v847_v10 = vpop.f32.mrb[8].mxu1 }
 0xc1a   :  { %v906_v11 = vadd.f32 %v847_v10, %v204_v9  ;;  %v849_v12 = vpop.f32.mrb[9].mxu1 }
 0xc1b   :  { %v851_v13 = vpop.f32.mrb[10].mxu1  ;;  %v856_v14 = vadd.f32 %v2122_v51, %v849_v12 }
 0xc1c   :  { %1813 = vtanh.f32 %v906_v11  ;;  %v907_v15 = vadd.f32 %v851_v13, %v207_v46  ;;  %v853_v16 = vpop.f32.mrb[11].mxu1  ;;  %v1627_v29 = vmul.f32 -1.442695, %v906_v11 }
 0xc1d   :  { %1815 = vtanh.f32 %v856_v14  ;;  %v857_v17 = vadd.f32 %v2122_v51, %v853_v16  ;;  %v1625_v19 = vmul.f32 -1.442695, %v856_v14 }
 0xc1e   :  { %1817 = vtanh.f32 %v907_v15  ;;  %v1628_v20 = vmul.f32 -1.442695, %v907_v15 }
 0xc1f   :  { %1819 = vtanh.f32 %v857_v17  ;;  %v1626_v21 = vmul.f32 -1.442695, %v857_v17 }
 0xc20   :  { %1821 = vpow2.f32 %v1627_v29 }
 0xc21   :  { %1823 = vpow2.f32 %v1625_v19 }
 0xc22   :  { %1825 = vpow2.f32 %v1628_v20 }
 0xc23   :  { %1827 = vpow2.f32 %v1626_v21 }
 0xc26   :  { %v1814_v31 = vpop.eup %1813 }
 0xc27   :  { %926 = vrot.lane.b32.xlu1 %v1814_v31, %s1966_s1  ;;  %v1816_v25 = vpop.eup %1815 }
 0xc28   :  { %v1818_v18 = vpop.eup %1817 }
 0xc29   :  { %928 = vrot.lane.b32.xlu0 %v1818_v18, %s1966_s1  ;;  %v1820_v4 = vpop.eup %1819 }
 0xc2a   :  { %v1822_v22 = vpop.eup %1821 }
 0xc2b   :  { %876 = vrot.lane.b32.xlu1 %v1816_v25, %s1966_s1  ;;  %v914_v23 = vadd.f32 1.0, %v1822_v22  ;;  %v1824_v36 = vpop.eup %1823  ;;  %v2357_v22 = vld [vmem:[%s2521_s3] ss:$0 sm:$0xff] }
 0xc2c   :  { %v1826_v37 = vpop.eup %1825  ;;  %v864_v48 = vadd.f32 1.0, %v1824_v36 }
 0xc2d   :  { %878 = vrot.lane.b32.xlu0 %v1820_v4, %s1966_s1  ;;  %1829 = vrcp.f32 %v914_v23  ;;  %v915_v49 = vadd.f32 1.0, %v1826_v37  ;;  %v1828_v50 = vpop.eup %1827 }
 0xc2e   :  { %1831 = vrcp.f32 %v864_v48  ;;  %v865_v52 = vadd.f32 1.0, %v1828_v50 }
 0xc2f   :  { %1833 = vrcp.f32 %v915_v49 }
 0xc30   :  { %1835 = vrcp.f32 %v865_v52 }
 0xc37   :  { %v1830_v61 = vpop.eup %1829 }
 0xc38   :  { %v1832_v6 = vpop.eup %1831  ;;  %v922_v63 = vmul.f32 %v1830_v61, %v2274_v42 }
 0xc39   :  { %v1834_v58 = vpop.eup %1833  ;;  %v872_v28 = vmul.f32 %v1832_v6, %v2279_v53 }
 0xc3a   :  { %v1836_v60 = vpop.eup %1835  ;;  %v923_v7 = vmul.f32 %v1834_v58, %v2281_v54 }
 0xc3b   :  { %v873_v42 = vmul.f32 %v1836_v60, %v2286_v56 }
 0xc99   :  { %v927_v55 = vpop.permute.xlu1 %926 }
 0xc9a   :  { %v932_v3 = vmul.f32 %v1830_v61, %v927_v55 }
 0xc9b   :  { %v929_v59 = vpop.permute.xlu0 %928 }
 0xc9c   :  { %936 = vrot.lane.b32.xlu1 %v932_v3, %s1967_s9  ;;  %v933_v8 = vmul.f32 %v1834_v58, %v929_v59 }
 0xc9d   :  { %v877_v57 = vpop.permute.xlu1 %876 }
 0xc9e   :  { %v882_v2 = vmul.f32 %v1832_v6, %v877_v57  ;;  %938 = vrot.lane.b32.xlu0 %v933_v8, %s1967_s9 }
 0xc9f   :  { %v879_v5 = vpop.permute.xlu0 %878 }
 0xca0   :  { %886 = vrot.lane.b32.xlu1 %v882_v2, %s1967_s9  ;;  %v883_v62 = vmul.f32 %v1836_v60, %v879_v5 }
 0xca2   :  { %888 = vrot.lane.b32.xlu0 %v883_v62, %s1967_s9 }
 0xd0e   :  { %v937_v0 = vpop.permute.xlu1 %936 }
 0xd0f   :  { %v2322_v1 = vadd.f32 %v937_v0, %v922_v63 }
 0xd10   :  { %v939_v44 = vpop.permute.xlu0 %938 }
 0xd11   :  { %1837 = vtanh.f32 %v2322_v1  ;;  %v2329_v10 = vadd.f32 %v939_v44, %v923_v7 }
 0xd12   :  { %v887_v43 = vpop.permute.xlu1 %886 }
 0xd13   :  { %v2327_v9 = vadd.f32 %v887_v43, %v872_v28 }
 0xd14   :  { %v889_v46 = vpop.permute.xlu0 %888 }
 0xd15   :  { %1839 = vtanh.f32 %v2327_v9  ;;  %v2334_v11 = vadd.f32 %v889_v46, %v873_v42 }
 0xd16   :  { %1841 = vtanh.f32 %v2329_v10 }
 0xd17   :  { %1843 = vtanh.f32 %v2334_v11 }
 0xd1b   :  { %v1838_v53 = vpop.eup %1837 }
 0xd1c   :  { %948 = vrot.lane.b32.xlu1 %v1838_v53, %s1966_s1 }
 0xd1f   :  { %v1840_v54 = vpop.eup %1839 }
 0xd20   :  { %v1842_v12 = vpop.eup %1841  ;;  %898 = vrot.lane.b32.xlu1 %v1840_v54, %s1966_s1 }
 0xd21   :  { %950 = vrot.lane.b32.xlu0 %v1842_v12, %s1966_s1  ;;  %v1844_v13 = vpop.eup %1843 }
 0xd25   :  { %900 = vrot.lane.b32.xlu0 %v1844_v13, %s1966_s1 }
 0xd8e   :  { %v949_v14 = vpop.permute.xlu1 %948 }
 0xd8f   :  { %v954_v56 = vmul.f32 %v1830_v61, %v949_v14 }
 0xd92   :  { %v899_v17 = vpop.permute.xlu1 %898 }
 0xd93   :  { %v951_v15 = vpop.permute.xlu0 %950  ;;  %v904_v18 = vmul.f32 %v1832_v6, %v899_v17 }
 0xd94   :  { %v955_v16 = vmul.f32 %v1834_v58, %v951_v15 }
 0xd96   :  { %v956_v31 = vpack.c.bf16 %v955_v16, %v954_v56 }
 0xd97   :  { %v901_v25 = vpop.permute.xlu0 %900 }
 0xd98   :  { %v905_v4 = vmul.f32 %v1836_v60, %v901_v25  ;;  %958 = vrot.lane.b32.xlu1 %v956_v31, %s1967_s9 }
 0xd9a   :  { %v962_v29 = vpack.c.bf16 %v905_v4, %v904_v18 }
 0xd9c   :  { %964 = vrot.lane.b32.xlu0 %v962_v29, %s1966_s1 }
 0xe0a   :  { %v959_v19 = vpop.permute.xlu1 %958 }
 0xe0b   :  { %961 = vst.msk [vmem:[#allocation2] sm:$0xff] %vm289_vm3, %v959_v19 }
 0xe0e   :  { %v965_v20 = vpop.permute.xlu0 %964 }
 0xe0f   :  { %967 = vst.msk [vmem:[#allocation2] sm:$0xff] %vm489_vm4, %v965_v20 }
 0xe16   :  { %v968_v21 = vld [vmem:[#allocation2] sm:$0xff] }
 0xe17   :  { %1629 = vmatmul.mubr.msk.bf16.vlgmr.msra.gmra.mrb[20].mxu0 %vm234_vm2, %v968_v21 }
 0xe18   :  { %1291 = vmatpush1.bf16.msra.mxu0 %v2053_v33  ;;  %1322 = vmatprep.mubr.bf16.mxu0 %v1968_v32  ;;  %v212_v33 = vadd.f32 %v2357_v22, %v2231_v24 }
 0xe19   :  { %1292 = vmatprep.subr.bf16.mxu0 %v2059_v34  ;;  %v215_v34 = vadd.f32 %v2357_v22, %v2235_v26 }
 0xe1c   :  { %1293 = vmatpush1.bf16.msra.mxu0 %v2064_v35 }
 0xe1d   :  { %1294 = vmatprep.subr.bf16.mxu0 %v2078_v38 }
 0xe20   :  { %1295 = vmatpush1.bf16.msra.mxu0 %v2083_v39 }
 0xe21   :  { %1296 = vmatprep.subr.bf16.mxu0 %v2088_v40 }
 0xe24   :  { %1297 = vmatpush1.bf16.msra.mxu0 %v2096_v41 }
 0xeea   :  { %v1006_v23 = vpop.f32.mrb[20].mxu0 }
 0xeeb   :  { %v1065_v35 = vadd.f32 %v1006_v23, %v212_v33  ;;  %v1008_v38 = vpop.f32.mrb[21].mxu0 }
 0xeec   :  { %v1010_v36 = vpop.f32.mrb[22].mxu0  ;;  %v1015_v39 = vadd.f32 %v2122_v51, %v1008_v38 }
 0xeed   :  { %1845 = vtanh.f32 %v1065_v35  ;;  %v1066_v40 = vadd.f32 %v1010_v36, %v215_v34  ;;  %v1012_v41 = vpop.f32.mrb[23].mxu0  ;;  %v1632_v50 = vmul.f32 -1.442695, %v1065_v35 }
 0xeee   :  { %1847 = vtanh.f32 %v1015_v39  ;;  %v1016_v37 = vadd.f32 %v2122_v51, %v1012_v41  ;;  %v1630_v52 = vmul.f32 -1.442695, %v1015_v39 }
 0xeef   :  { %1849 = vtanh.f32 %v1066_v40  ;;  %v1633_v61 = vmul.f32 -1.442695, %v1066_v40 }
 0xef0   :  { %1851 = vtanh.f32 %v1016_v37  ;;  %v1631_v51 = vmul.f32 -1.442695, %v1016_v37  ;;  %v1958_v37 = vld [vmem:[%s2522_s2] ss:$8 sps:$4 sm:$0xff]  }
 0xef1   :  { %1853 = vpow2.f32 %v1632_v50  ;;  %v1964_v50 = vld [vmem:[%s2522_s2 + $0x30] ss:$8 sps:$4 sm:$0xff]  }
 0xef2   :  { %1855 = vpow2.f32 %v1630_v52  ;;  %v220_v52 = vadd.f32 %v2357_v22, %v2253_v27 }
 0xef3   :  { %1857 = vpow2.f32 %v1633_v61 }
 0xef4   :  { %1859 = vpow2.f32 %v1631_v51  ;;  %v223_v51 = vadd.f32 %v2357_v22, %v2257_v30 }
 0xef7   :  { %v1846_v48 = vpop.eup %1845 }
 0xef8   :  { %1085 = vrot.lane.b32.xlu1 %v1846_v48, %s1966_s1  ;;  %v1848_v24 = vpop.eup %1847  ;;  %v1959_v48 = vld [vmem:[%s2522_s2 + $0x14] ss:$8 sps:$4 sm:$0xff]  }
 0xef9   :  { %v1850_v49 = vpop.eup %1849 }
 0xefa   :  { %1087 = vrot.lane.b32.xlu0 %v1850_v49, %s1966_s1  ;;  %v1852_v26 = vpop.eup %1851  ;;  %v1961_v49 = vld [vmem:[%s2522_s2 + $0x24] ss:$8 sps:$4 sm:$0xff]  }
 0xefb   :  { %v1854_v55 = vpop.eup %1853 }
 0xefc   :  { %1035 = vrot.lane.b32.xlu1 %v1848_v24, %s1966_s1  ;;  %v1073_v3 = vadd.f32 1.0, %v1854_v55  ;;  %v1856_v6 = vpop.eup %1855  ;;  %v1960_v24 = vld [vmem:[%s2522_s2 + $0x10] ss:$8 sps:$4 sm:$0xff]  }
 0xefd   :  { %v1858_v57 = vpop.eup %1857  ;;  %v1023_v58 = vadd.f32 1.0, %v1856_v6 }
 0xefe   :  { %1037 = vrot.lane.b32.xlu0 %v1852_v26, %s1966_s1  ;;  %1861 = vrcp.f32 %v1073_v3  ;;  %v1074_v59 = vadd.f32 1.0, %v1858_v57  ;;  %v1860_v2 = vpop.eup %1859  ;;  %v1962_v26 = vld [vmem:[%s2522_s2 + $0x20] ss:$8 sps:$4 sm:$0xff]  }
 0xeff   :  { %1863 = vrcp.f32 %v1023_v58  ;;  %v1024_v8 = vadd.f32 1.0, %v1860_v2  ;;  %v2427_v57 = vld [vmem:[%s2523_s4] ss:$0 sm:$0xff] }
 0xf00   :  { %1865 = vrcp.f32 %v1074_v59 }
 0xf01   :  { %1867 = vrcp.f32 %v1024_v8 }
 0xf08   :  { %v1862_v60 = vpop.eup %1861 }
 0xf09   :  { %v1864_v63 = vpop.eup %1863  ;;  %v1081_v54 = vmul.f32 %v1862_v60, %v2322_v1 }
 0xf0a   :  { %v1866_v28 = vpop.eup %1865  ;;  %v1031_v14 = vmul.f32 %v1864_v63, %v2327_v9 }
 0xf0b   :  { %v1868_v42 = vpop.eup %1867  ;;  %v1082_v15 = vmul.f32 %v1866_v28, %v2329_v10 }
 0xf0c   :  { %v1032_v1 = vmul.f32 %v1868_v42, %v2334_v11 }
 0xf6a   :  { %v1086_v5 = vpop.permute.xlu1 %1085 }
 0xf6b   :  { %v1091_v62 = vmul.f32 %v1862_v60, %v1086_v5 }
 0xf6c   :  { %v1088_v7 = vpop.permute.xlu0 %1087 }
 0xf6d   :  { %1095 = vrot.lane.b32.xlu1 %v1091_v62, %s1967_s9  ;;  %v1092_v44 = vmul.f32 %v1866_v28, %v1088_v7 }
 0xf6e   :  { %v1036_v0 = vpop.permute.xlu1 %1035 }
 0xf6f   :  { %v1041_v43 = vmul.f32 %v1864_v63, %v1036_v0  ;;  %1097 = vrot.lane.b32.xlu0 %v1092_v44, %s1967_s9 }
 0xf70   :  { %v1038_v46 = vpop.permute.xlu0 %1037 }
 0xf71   :  { %1045 = vrot.lane.b32.xlu1 %v1041_v43, %s1967_s9  ;;  %v1042_v53 = vmul.f32 %v1868_v42, %v1038_v46 }
 0xf73   :  { %1047 = vrot.lane.b32.xlu0 %v1042_v53, %s1967_s9 }
 0xfdf   :  { %v1096_v12 = vpop.permute.xlu1 %1095 }
 0xfe0   :  { %v2374_v13 = vadd.f32 %v1096_v12, %v1081_v54 }
 0xfe1   :  { %v1098_v16 = vpop.permute.xlu0 %1097 }
 0xfe2   :  { %1869 = vtanh.f32 %v2374_v13  ;;  %v2381_v31 = vadd.f32 %v1098_v16, %v1082_v15 }
 0xfe3   :  { %v1046_v56 = vpop.permute.xlu1 %1045 }
 0xfe4   :  { %v2379_v17 = vadd.f32 %v1046_v56, %v1031_v14 }
 0xfe5   :  { %v1048_v25 = vpop.permute.xlu0 %1047 }
 0xfe6   :  { %1871 = vtanh.f32 %v2379_v17  ;;  %v2386_v18 = vadd.f32 %v1048_v25, %v1032_v1 }
 0xfe7   :  { %1873 = vtanh.f32 %v2381_v31 }
 0xfe8   :  { %1875 = vtanh.f32 %v2386_v18 }
 0xfec   :  { %v1870_v9 = vpop.eup %1869 }
 0xfed   :  { %1107 = vrot.lane.b32.xlu1 %v1870_v9, %s1966_s1 }
 0xff0   :  { %v1872_v10 = vpop.eup %1871 }
 0xff1   :  { %v1874_v4 = vpop.eup %1873  ;;  %1057 = vrot.lane.b32.xlu1 %v1872_v10, %s1966_s1 }
 0xff2   :  { %1109 = vrot.lane.b32.xlu0 %v1874_v4, %s1966_s1  ;;  %v1876_v29 = vpop.eup %1875 }
 0xff6   :  { %1059 = vrot.lane.b32.xlu0 %v1876_v29, %s1966_s1 }
0x105f   :  { %v1108_v19 = vpop.permute.xlu1 %1107 }
0x1060   :  { %v1113_v11 = vmul.f32 %v1862_v60, %v1108_v19 }
0x1063   :  { %v1058_v33 = vpop.permute.xlu1 %1057 }
0x1064   :  { %v1110_v20 = vpop.permute.xlu0 %1109  ;;  %v1063_v35 = vmul.f32 %v1864_v63, %v1058_v33 }
0x1065   :  { %v1114_v21 = vmul.f32 %v1866_v28, %v1110_v20 }
0x1067   :  { %v1115_v23 = vpack.c.bf16 %v1114_v21, %v1113_v11 }
0x1068   :  { %v1060_v34 = vpop.permute.xlu0 %1059 }
0x1069   :  { %v1064_v38 = vmul.f32 %v1868_v42, %v1060_v34  ;;  %1117 = vrot.lane.b32.xlu1 %v1115_v23, %s1967_s9 }
0x106b   :  { %v1121_v36 = vpack.c.bf16 %v1064_v38, %v1063_v35 }
0x106d   :  { %1123 = vrot.lane.b32.xlu0 %v1121_v36, %s1966_s1 }
0x10db   :  { %v1118_v39 = vpop.permute.xlu1 %1117 }
0x10dc   :  { %1120 = vst.msk [vmem:[#allocation2] sm:$0xff] %vm289_vm3, %v1118_v39 }
0x10df   :  { %v1124_v40 = vpop.permute.xlu0 %1123 }
0x10e0   :  { %1126 = vst.msk [vmem:[#allocation2] sm:$0xff] %vm489_vm4, %v1124_v40 }
0x10e7   :  { %v1127_v41 = vld [vmem:[#allocation2] sm:$0xff] }
0x10e8   :  { %1634 = vmatmul.mubr.msk.bf16.vlgmr.msra.gmra.mrb[12].mxu1 %vm234_vm2, %v1127_v41 }
0x10e9   :  { %1450 = vmatpush1.bf16.msra.mxu1 %v1958_v37  ;;  %1481 = vmatprep.mubr.bf16.mxu1 %v1968_v32  ;;  %v1963_v32 = vld [vmem:[%s2522_s2 + $0x34] ss:$8 sps:$4 sm:$0xff]  }
0x10ea   :  { %1451 = vmatprep.subr.bf16.mxu1 %v1959_v48 }
0x10ed   :  { %1452 = vmatpush1.bf16.msra.mxu1 %v1960_v24 }
0x10ee   :  { %1453 = vmatprep.subr.bf16.mxu1 %v1961_v49 }
0x10f1   :  { %1454 = vmatpush1.bf16.msra.mxu1 %v1962_v26 }
0x10f2   :  { %1455 = vmatprep.subr.bf16.mxu1 %v1963_v32 }
0x10f5   :  { %1456 = vmatpush1.bf16.msra.mxu1 %v1964_v50 }
0x11bb   :  { %v1165_v61 = vpop.f32.mrb[12].mxu1 }
0x11bc   :  { %v1224_v55 = vadd.f32 %v1165_v61, %v220_v52  ;;  %v1167_v3 = vpop.f32.mrb[13].mxu1 }
0x11bd   :  { %v1169_v6 = vpop.f32.mrb[14].mxu1  ;;  %v1174_v58 = vadd.f32 %v2427_v57, %v1167_v3 }
0x11be   :  { %1877 = vtanh.f32 %v1224_v55  ;;  %v1225_v59 = vadd.f32 %v1169_v6, %v223_v51  ;;  %v1171_v2 = vpop.f32.mrb[15].mxu1  ;;  %v1637_v62 = vmul.f32 -1.442695, %v1224_v55 }
0x11bf   :  { %1879 = vtanh.f32 %v1174_v58  ;;  %v1175_v27 = vadd.f32 %v2427_v57, %v1171_v2  ;;  %v1635_v63 = vmul.f32 -1.442695, %v1174_v58 }
0x11c0   :  { %1881 = vtanh.f32 %v1225_v59  ;;  %v1638_v0 = vmul.f32 -1.442695, %v1225_v59  ;;  %v228_v59 = vadd.f32 %v2357_v22, %v2251_v45 }
0x11c1   :  { %1883 = vtanh.f32 %v1175_v27  ;;  %v1636_v28 = vmul.f32 -1.442695, %v1175_v27  ;;  %v231_v27 = vadd.f32 %v2357_v22, %v2255_v47 }
0x11c2   :  { %1885 = vpow2.f32 %v1637_v62 }
0x11c3   :  { %1887 = vpow2.f32 %v1635_v63 }
0x11c4   :  { %1889 = vpow2.f32 %v1638_v0 }
0x11c5   :  { %1891 = vpow2.f32 %v1636_v28 }
0x11c8   :  { %v1878_v8 = vpop.eup %1877 }
0x11c9   :  { %1244 = vrot.lane.b32.xlu1 %v1878_v8, %s1966_s1  ;;  %v1880_v30 = vpop.eup %1879 }
0x11ca   :  { %v1882_v60 = vpop.eup %1881 }
0x11cb   :  { %1246 = vrot.lane.b32.xlu0 %v1882_v60, %s1966_s1  ;;  %v1884_v5 = vpop.eup %1883 }
0x11cc   :  { %v1886_v7 = vpop.eup %1885 }
0x11cd   :  { %1194 = vrot.lane.b32.xlu1 %v1880_v30, %s1966_s1  ;;  %v1232_v43 = vadd.f32 1.0, %v1886_v7  ;;  %v1888_v44 = vpop.eup %1887 }
0x11ce   :  { %v1890_v42 = vpop.eup %1889  ;;  %v1182_v46 = vadd.f32 1.0, %v1888_v44 }
0x11cf   :  { %1196 = vrot.lane.b32.xlu0 %v1884_v5, %s1966_s1  ;;  %1893 = vrcp.f32 %v1232_v43  ;;  %v1233_v53 = vadd.f32 1.0, %v1890_v42  ;;  %v1892_v54 = vpop.eup %1891 }
0x11d0   :  { %1895 = vrcp.f32 %v1182_v46  ;;  %v1183_v12 = vadd.f32 1.0, %v1892_v54 }
0x11d1   :  { %1897 = vrcp.f32 %v1233_v53 }
0x11d2   :  { %1899 = vrcp.f32 %v1183_v12 }
0x11d9   :  { %v1894_v14 = vpop.eup %1893 }
0x11da   :  { %v1896_v16 = vpop.eup %1895  ;;  %v1240_v11 = vmul.f32 %v1894_v14, %v2374_v13 }
0x11db   :  { %v1898_v25 = vpop.eup %1897  ;;  %v1190_v23 = vmul.f32 %v1896_v16, %v2379_v17 }
0x11dc   :  { %v1900_v29 = vpop.eup %1899  ;;  %v1241_v34 = vmul.f32 %v1898_v25, %v2381_v31 }
0x11dd   :  { %v1191_v13 = vmul.f32 %v1900_v29, %v2386_v18 }
0x123b   :  { %v1245_v15 = vpop.permute.xlu1 %1244 }
0x123c   :  { %v1250_v56 = vmul.f32 %v1894_v14, %v1245_v15 }
0x123d   :  { %v1247_v9 = vpop.permute.xlu0 %1246 }
0x123e   :  { %1254 = vrot.lane.b32.xlu1 %v1250_v56, %s1967_s9  ;;  %v1251_v4 = vmul.f32 %v1898_v25, %v1247_v9 }
0x123f   :  { %v1195_v1 = vpop.permute.xlu1 %1194 }
0x1240   :  { %v1200_v10 = vmul.f32 %v1896_v16, %v1195_v1  ;;  %1256 = vrot.lane.b32.xlu0 %v1251_v4, %s1967_s9 }
0x1241   :  { %v1197_v19 = vpop.permute.xlu0 %1196 }
0x1242   :  { %1204 = vrot.lane.b32.xlu1 %v1200_v10, %s1967_s9  ;;  %v1201_v20 = vmul.f32 %v1900_v29, %v1197_v19 }
0x1244   :  { %1206 = vrot.lane.b32.xlu0 %v1201_v20, %s1967_s9 }
0x12b0   :  { %v1255_v21 = vpop.permute.xlu1 %1254 }
0x12b1   :  { %v2440_v33 = vadd.f32 %v1255_v21, %v1240_v11 }
0x12b2   :  { %v1257_v38 = vpop.permute.xlu0 %1256 }
0x12b3   :  { %1901 = vtanh.f32 %v2440_v33  ;;  %v2447_v39 = vadd.f32 %v1257_v38, %v1241_v34 }
0x12b4   :  { %v1205_v35 = vpop.permute.xlu1 %1204 }
0x12b5   :  { %v2445_v36 = vadd.f32 %v1205_v35, %v1190_v23 }
0x12b6   :  { %v1207_v40 = vpop.permute.xlu0 %1206 }
0x12b7   :  { %1903 = vtanh.f32 %v2445_v36  ;;  %v2452_v41 = vadd.f32 %v1207_v40, %v1191_v13 }
0x12b8   :  { %1905 = vtanh.f32 %v2447_v39 }
0x12b9   :  { %1907 = vtanh.f32 %v2452_v41 }
0x12bd   :  { %v1902_v17 = vpop.eup %1901 }
0x12be   :  { %1266 = vrot.lane.b32.xlu1 %v1902_v17, %s1966_s1 }
0x12c1   :  { %v1904_v31 = vpop.eup %1903 }
0x12c2   :  { %v1906_v37 = vpop.eup %1905  ;;  %1216 = vrot.lane.b32.xlu1 %v1904_v31, %s1966_s1 }
0x12c3   :  { %1268 = vrot.lane.b32.xlu0 %v1906_v37, %s1966_s1  ;;  %v1908_v48 = vpop.eup %1907 }
0x12c7   :  { %1218 = vrot.lane.b32.xlu0 %v1908_v48, %s1966_s1 }
0x1330   :  { %v1267_v24 = vpop.permute.xlu1 %1266 }
0x1331   :  { %v1272_v18 = vmul.f32 %v1894_v14, %v1267_v24 }
0x1334   :  { %v1217_v32 = vpop.permute.xlu1 %1216 }
0x1335   :  { %v1269_v49 = vpop.permute.xlu0 %1268  ;;  %v1222_v61 = vmul.f32 %v1896_v16, %v1217_v32 }
0x1336   :  { %v1273_v26 = vmul.f32 %v1898_v25, %v1269_v49 }
0x1338   :  { %v1274_v50 = vpack.c.bf16 %v1273_v26, %v1272_v18 }
0x1339   :  { %v1219_v52 = vpop.permute.xlu0 %1218 }
0x133a   :  { %v1223_v51 = vmul.f32 %v1900_v29, %v1219_v52  ;;  %1276 = vrot.lane.b32.xlu1 %v1274_v50, %s1967_s9 }
0x133c   :  { %v1280_v55 = vpack.c.bf16 %v1223_v51, %v1222_v61 }
0x133e   :  { %1282 = vrot.lane.b32.xlu0 %v1280_v55, %s1966_s1 }
0x13ac   :  { %v1277_v3 = vpop.permute.xlu1 %1276 }
0x13ad   :  { %1279 = vst.msk [vmem:[#allocation2] sm:$0xff] %vm289_vm3, %v1277_v3 }
0x13b0   :  { %v1283_v6 = vpop.permute.xlu0 %1282 }
0x13b1   :  { %1285 = vst.msk [vmem:[#allocation2] sm:$0xff] %vm489_vm4, %v1283_v6 }
0x13b8   :  { %v1286_v58 = vld [vmem:[#allocation2] sm:$0xff] }
0x13b9   :  { %1639 = vmatmul.mubr.msk.bf16.vlgmr.msra.gmra.mrb[24].mxu0 %vm234_vm2, %v1286_v58 }
0x148c   :  { %v1324_v2 = vpop.f32.mrb[24].mxu0 }
0x148d   :  { %v1383_v8 = vadd.f32 %v1324_v2, %v228_v59  ;;  %v1326_v30 = vpop.f32.mrb[25].mxu0 }
0x148e   :  { %v1328_v60 = vpop.f32.mrb[26].mxu0  ;;  %v1333_v5 = vadd.f32 %v2427_v57, %v1326_v30 }
0x148f   :  { %1909 = vtanh.f32 %v1383_v8  ;;  %v1384_v62 = vadd.f32 %v1328_v60, %v231_v27  ;;  %v1330_v63 = vpop.f32.mrb[27].mxu0  ;;  %v1642_v22 = vmul.f32 -1.442695, %v1383_v8 }
0x1490   :  { %1911 = vtanh.f32 %v1333_v5  ;;  %v1334_v0 = vadd.f32 %v2427_v57, %v1330_v63  ;;  %v1640_v43 = vmul.f32 -1.442695, %v1333_v5 }
0x1491   :  { %1913 = vtanh.f32 %v1384_v62  ;;  %v1643_v44 = vmul.f32 -1.442695, %v1384_v62 }
0x1492   :  { %1915 = vtanh.f32 %v1334_v0  ;;  %v1641_v42 = vmul.f32 -1.442695, %v1334_v0 }
0x1493   :  { %1917 = vpow2.f32 %v1642_v22 }
0x1494   :  { %1919 = vpow2.f32 %v1640_v43 }
0x1495   :  { %1921 = vpow2.f32 %v1643_v44 }
0x1496   :  { %1923 = vpow2.f32 %v1641_v42 }
0x1499   :  { %v1910_v28 = vpop.eup %1909 }
0x149a   :  { %1403 = vrot.lane.b32.xlu1 %v1910_v28, %s1966_s1  ;;  %v1912_v45 = vpop.eup %1911 }
0x149b   :  { %v1914_v7 = vpop.eup %1913 }
0x149c   :  { %1405 = vrot.lane.b32.xlu0 %v1914_v7, %s1966_s1  ;;  %v1916_v47 = vpop.eup %1915 }
0x149d   :  { %v1918_v46 = vpop.eup %1917 }
0x149e   :  { %1353 = vrot.lane.b32.xlu1 %v1912_v45, %s1966_s1  ;;  %v1391_v53 = vadd.f32 1.0, %v1918_v46  ;;  %v1920_v54 = vpop.eup %1919 }
0x149f   :  { %v1922_v12 = vpop.eup %1921  ;;  %v1341_v14 = vadd.f32 1.0, %v1920_v54 }
0x14a0   :  { %1355 = vrot.lane.b32.xlu0 %v1916_v47, %s1966_s1  ;;  %1925 = vrcp.f32 %v1391_v53  ;;  %v1392_v15 = vadd.f32 1.0, %v1922_v12  ;;  %v1924_v56 = vpop.eup %1923 }
0x14a1   :  { %1927 = vrcp.f32 %v1341_v14  ;;  %v1342_v16 = vadd.f32 1.0, %v1924_v56 }
0x14a2   :  { %1929 = vrcp.f32 %v1392_v15 }
0x14a3   :  { %1931 = vrcp.f32 %v1342_v16 }
0x14aa   :  { %v1926_v1 = vpop.eup %1925 }
0x14ab   :  { %v1928_v10 = vpop.eup %1927  ;;  %v1399_v35 = vmul.f32 %v1926_v1, %v2440_v33 }
0x14ac   :  { %v1930_v29 = vpop.eup %1929  ;;  %v1349_v40 = vmul.f32 %v1928_v10, %v2445_v36 }
0x14ad   :  { %v1932_v21 = vpop.eup %1931  ;;  %v1400_v17 = vmul.f32 %v1930_v29, %v2447_v39 }
0x14ae   :  { %v1350_v49 = vmul.f32 %v1932_v21, %v2452_v41 }
0x150c   :  { %v1404_v25 = vpop.permute.xlu1 %1403 }
0x150d   :  { %v1409_v9 = vmul.f32 %v1926_v1, %v1404_v25 }
0x150e   :  { %v1406_v19 = vpop.permute.xlu0 %1405 }
0x150f   :  { %1413 = vrot.lane.b32.xlu1 %v1409_v9, %s1967_s9  ;;  %v1410_v11 = vmul.f32 %v1930_v29, %v1406_v19  ;;  %v12_v19 = vstv %s2525_s6 }
0x1510   :  { %v1354_v4 = vpop.permute.xlu1 %1353  ;;  %13 = vst [vmem:[#allocation3] sm:$0x1] %v12_v19 }
0x1511   :  { %v1359_v20 = vmul.f32 %v1928_v10, %v1354_v4  ;;  %1415 = vrot.lane.b32.xlu0 %v1410_v11, %s1967_s9  ;;  %v1647_v4 = vld [vmem:[%s2524_s5] ss:$0 sm:$0xff] }
0x1512   :  { %v1356_v23 = vpop.permute.xlu0 %1355 }
0x1513   :  { %1363 = vrot.lane.b32.xlu1 %v1359_v20, %s1967_s9  ;;  %v1360_v34 = vmul.f32 %v1932_v21, %v1356_v23 }
0x1515   :  { %1365 = vrot.lane.b32.xlu0 %v1360_v34, %s1967_s9 }
0x1581   :  { %v1414_v38 = vpop.permute.xlu1 %1413 }
0x1582   :  { %v1419_v13 = vadd.f32 %v1414_v38, %v1399_v35 }
0x1583   :  { %v1416_v37 = vpop.permute.xlu0 %1415 }
0x1584   :  { %1933 = vtanh.f32 %v1419_v13  ;;  %v1420_v24 = vadd.f32 %v1416_v37, %v1400_v17  ;;  %v1648_v37 = vld [vmem:[#allocation3] ss:$0 sm:$0xff] }
0x1585   :  { %v1364_v31 = vpop.permute.xlu1 %1363 }
0x1586   :  { %v2481_v48 = vadd.f32 %v1364_v31, %v1349_v40 }
0x1587   :  { %v1366_v18 = vpop.permute.xlu0 %1365 }
0x1588   :  { %1935 = vtanh.f32 %v2481_v48  ;;  %v1370_v26 = vadd.f32 %v1366_v18, %v1350_v49 }
0x1589   :  { %1937 = vtanh.f32 %v1420_v24 }
0x158a   :  { %1939 = vtanh.f32 %v1370_v26 }
0x158e   :  { %v1934_v33 = vpop.eup %1933 }
0x158f   :  { %1425 = vrot.lane.b32.xlu1 %v1934_v33, %s1966_s1 }
0x1592   :  { %v1936_v32 = vpop.eup %1935 }
0x1593   :  { %v1938_v36 = vpop.eup %1937  ;;  %1375 = vrot.lane.b32.xlu1 %v1936_v32, %s1966_s1 }
0x1594   :  { %1427 = vrot.lane.b32.xlu0 %v1938_v36, %s1966_s1  ;;  %v1940_v39 = vpop.eup %1939 }
0x1598   :  { %1377 = vrot.lane.b32.xlu0 %v1940_v39, %s1966_s1 }
0x1601   :  { %v1426_v50 = vpop.permute.xlu1 %1425 }
0x1602   :  { %v1431_v61 = vmul.f32 %v1926_v1, %v1426_v50 }
0x1605   :  { %v1376_v41 = vpop.permute.xlu1 %1375 }
0x1606   :  { %v1428_v52 = vpop.permute.xlu0 %1427  ;;  %v1381_v6 = vmul.f32 %v1928_v10, %v1376_v41 }
0x1607   :  { %v1432_v51 = vmul.f32 %v1930_v29, %v1428_v52 }
0x1609   :  { %v1433_v55 = vpack.c.bf16 %v1432_v51, %v1431_v61 }
0x160a   :  { %v1378_v3 = vpop.permute.xlu0 %1377 }
0x160b   :  { %v1382_v58 = vmul.f32 %v1932_v21, %v1378_v3  ;;  %1435 = vrot.lane.b32.xlu1 %v1433_v55, %s1967_s9 }
0x160d   :  { %v1439_v59 = vpack.c.bf16 %v1382_v58, %v1381_v6 }
0x160f   :  { %1441 = vrot.lane.b32.xlu0 %v1439_v59, %s1966_s1 }
0x167d   :  { %v1436_v2 = vpop.permute.xlu1 %1435 }
0x167e   :  { %1438 = vst.msk [vmem:[#allocation2] sm:$0xff] %vm289_vm3, %v1436_v2 }
0x1681   :  { %v1442_v27 = vpop.permute.xlu0 %1441 }
0x1682   :  { %1444 = vst.msk [vmem:[#allocation2] sm:$0xff] %vm489_vm4, %v1442_v27 }
0x1689   :  { %v1445_v8 = vld [vmem:[#allocation2] sm:$0xff] }
0x168a   :  { %1644 = vmatmul.mubr.msk.bf16.vlgmr.msra.gmra.mrb[16].mxu1 %vm234_vm2, %v1445_v8 }
0x175d   :  { %v1483_v30 = vpop.f32.mrb[16].mxu1 }
0x175e   :  { %v1484_v60 = vpop.f32.mrb[17].mxu1 }
0x175f   :  { %v1490_v5 = vadd.f32 %v2427_v57, %v1484_v60  ;;  %v1486_v62 = vpop.f32.mrb[18].mxu1 }
0x1760   :  { %v1487_v63 = vpop.f32.mrb[19].mxu1 }
0x1761   :  { %1941 = vtanh.f32 %v1490_v5  ;;  %v1491_v0 = vadd.f32 %v2427_v57, %v1487_v63  ;;  %v1645_v7 = vmul.f32 -1.442695, %v1490_v5 }
0x1763   :  { %1943 = vtanh.f32 %v1491_v0  ;;  %v1646_v47 = vmul.f32 -1.442695, %v1491_v0 }
0x1764   :  { %1945 = vpow2.f32 %v1645_v7 }
0x1765   :  { %1947 = vpow2.f32 %v1646_v47 }
0x176b   :  { %v1942_v28 = vpop.eup %1941 }
0x176c   :  { %1510 = vrot.lane.b32.xlu1 %v1942_v28, %s1966_s1 }
0x176d   :  { %v1944_v45 = vpop.eup %1943 }
0x176e   :  { %1512 = vrot.lane.b32.xlu0 %v1944_v45, %s1966_s1  ;;  %v1946_v22 = vpop.eup %1945 }
0x176f   :  { %v1948_v43 = vpop.eup %1947  ;;  %v1498_v44 = vadd.f32 1.0, %v1946_v22 }
0x1770   :  { %v1499_v42 = vadd.f32 1.0, %v1948_v43 }
0x1771   :  { %1949 = vrcp.f32 %v1498_v44 }
0x1772   :  { %1951 = vrcp.f32 %v1499_v42 }
0x177b   :  { %v1950_v46 = vpop.eup %1949 }
0x177c   :  { %v1952_v54 = vpop.eup %1951  ;;  %v1506_v15 = vmul.f32 %v1950_v46, %v2481_v48 }
0x177d   :  { %v1507_v1 = vmul.f32 %v1952_v54, %v1370_v26 }
0x17de   :  { %v1511_v53 = vpop.permute.xlu1 %1510 }
0x17df   :  { %v1516_v57 = vmul.f32 %v1950_v46, %v1511_v53 }
0x17e0   :  { %v1513_v12 = vpop.permute.xlu0 %1512 }
0x17e1   :  { %1520 = vrot.lane.b32.xlu1 %v1516_v57, %s1967_s9  ;;  %v1517_v14 = vmul.f32 %v1952_v54, %v1513_v12 }
0x17e3   :  { %1522 = vrot.lane.b32.xlu0 %v1517_v14, %s1967_s9 }
0x1853   :  { %v1521_v56 = vpop.permute.xlu1 %1520 }
0x1854   :  { %v1526_v16 = vadd.f32 %v1521_v56, %v1506_v15 }
0x1855   :  { %v1523_v25 = vpop.permute.xlu0 %1522 }
0x1856   :  { %1953 = vtanh.f32 %v1526_v16  ;;  %v1527_v9 = vadd.f32 %v1523_v25, %v1507_v1 }
0x1858   :  { %1955 = vtanh.f32 %v1527_v9 }
0x1860   :  { %v1954_v10 = vpop.eup %1953 }
0x1861   :  { %1532 = vrot.lane.b32.xlu1 %v1954_v10, %s1966_s1 }
0x1862   :  { %v1956_v29 = vpop.eup %1955 }
0x1863   :  { %1534 = vrot.lane.b32.xlu0 %v1956_v29, %s1966_s1 }
0x1865   :  { %1546 = vrot.lane.b32.xlu1 %v1647_v4, %s1969_s12 }
0x18d3   :  { %v1533_v20 = vpop.permute.xlu1 %1532 }
0x18d4   :  { %v1538_v11 = vmul.f32 %v1950_v46, %v1533_v20 }
0x18d5   :  { %v1535_v21 = vpop.permute.xlu0 %1534 }
0x18d6   :  { %v1539_v23 = vmul.f32 %v1952_v54, %v1535_v21 }
0x18d7   :  { %v1547_v34 = vpop.permute.xlu1 %1546 }
0x18d8   :  { %v1549_v35 = vmul.f32 %v1547_v34, %v1538_v11  ;;  %v1550_v38 = vmul.f32 %v1547_v34, %v1539_v23 }
0x18da   :  { %1553 = vrot.lane.b32.xlu0 %v1549_v35, %s1967_s9  ;;  %1555 = vrot.lane.b32.xlu1 %v1550_v38, %s1967_s9 }
0x194c   :  { %v1554_v13 = vpop.permute.xlu0 %1553  ;;  %v1556_v40 = vpop.permute.xlu1 %1555 }
0x194d   :  { %v1559_v17 = vsel %vm289_vm3, %v1554_v13, 0.0  ;;  %v1562_v31 = vsel %vm289_vm3, %v1556_v40, 0.0 }
0x194e   :  { %1560 = vadd.xlane.f32.xlu0 %v1559_v17  ;;  %1563 = vadd.xlane.f32.xlu1 %v1562_v31 }
0x19db   :  { %v1561_v48 = vpop.xlane.xlu0 %1560  ;;  %v1564_v24 = vpop.xlane.xlu1 %1563 }
0x19dc   :  { %v1572_v49 = vadd.f32 %v1648_v37, %v1561_v48  ;;  %v1573_v18 = vadd.f32 %v1648_v37, %v1564_v24 }
0x19de   :  { %1575 = vst.msk [vmem:[%s2526_s7] sm:$0xff] %vm1574_vm5, %v1572_v49  ;;  %1576 = vst.msk [vmem:[%s2526_s7 + $0x8] sm:$0xff] %vm1574_vm5, %v1573_v18 }

</bundles_post_ra>
